<compile_context>
chip_gen: v6e
topology: v6e:2x2x1
jax: 0.10.0
libtpu: 0.0.40
codegen_flags: <defaults>
</compile_context>

<pallas_src>
import functools

import jax
import jax.numpy as jnp
from jax.experimental import pallas as pl
from jax.experimental.pallas import tpu as pltpu


_MXU_DTYPE = jnp.bfloat16    # bf16 MXU operands, f32 accumulation
_LN_EPS = 1e-12
_NEG_INF = -10000.0


# ----------------------------- in-kernel helpers ----------------------------

def _mxu_dot(a, b):
    """a @ b on the MXU: bf16 operands (no-op cast if already bf16), f32 acc."""
    return jnp.dot(a.astype(_MXU_DTYPE), b.astype(_MXU_DTYPE),
                   preferred_element_type=jnp.float32)


def _mxu_dot_t(a, b):
    """a @ b.T on the MXU (contract last dims): bf16 operands, f32 acc."""
    return jax.lax.dot_general(
        a.astype(_MXU_DTYPE), b.astype(_MXU_DTYPE),
        dimension_numbers=(((1,), (1,)), ((), ())),
        preferred_element_type=jnp.float32)


def _layernorm(x, g, b, eps=_LN_EPS):
    mu = jnp.mean(x, axis=-1, keepdims=True)
    var = jnp.mean(jnp.square(x - mu), axis=-1, keepdims=True)
    return (x - mu) * jax.lax.rsqrt(var + eps) * g + b


# ------------------------------- fused kernel -------------------------------

def _bert_kernel(vl_ref,                                    # scalar prefetch (SMEM)
                 tok_ref, seg_ref, pos_ref, embg_ref, embb_ref,
                 wqkv_ref, bqkv_ref, wo_ref, bo_ref,
                 ln1g_ref, ln1b_ref, w1_ref, b1_ref, w2_ref, b2_ref,
                 ln2g_ref, ln2b_ref,
                 pw_ref, pb_ref, cw_ref, cb_ref,
                 logits_ref,                                # output (1, Cp)
                 x_sc,                                      # VMEM scratch (S, H)
                 *, S, nH, dH):
    """Grid point (b, l): run transformer layer l for batch element b.

    l == 0 prologue: embedding sum + LayerNorm.
    l == L-1 epilogue: pooler(tanh) + classifier on the [CLS] row.
    Activations are carried across the (sequential) layer axis in x_sc.
    """
    b = pl.program_id(0)
    l = pl.program_id(1)
    n_layers = pl.num_programs(1)
    H = nH * dH

    # ---- embedding sum + LayerNorm (only for the first layer iteration) ----
    @pl.when(l == 0)
    def _():
        x0 = tok_ref[...] + seg_ref[...] + pos_ref[...]     # (S, H) f32
        x_sc[...] = _layernorm(x0, embg_ref[...], embb_ref[...])

    x = x_sc[...]                                           # (S, H) f32

    # ---- key-side padding mask from valid_length (SMEM scalar prefetch) ----
    # gen_attention_mask: positions < valid_length[b] are attendable.
    vl = vl_ref[b]
    key_pos = jax.lax.broadcasted_iota(jnp.int32, (1, S), 1)
    add_mask = jnp.where(key_pos < vl, 0.0, _NEG_INF)       # (1, S), bcast over q & heads

    # ---- fused QKV projection: one (S, H) @ (H, 3H) MXU matmul (bf16 weights,
    #      1/sqrt(dH) already folded into the Q columns) ----
    qkv = _mxu_dot(x, wqkv_ref[...]) + bqkv_ref[...]        # (S, 3H) f32

    # ---- multi-head attention with the output projection fused per head:
    #      accumulate into a lane-dense (S, H) f32 buffer (no sub-128 stores,
    #      no ctx scratch slab). ----
    # TODO(synk): at real sizes, move heads to a batched/grid axis instead of
    # per-head lane slices of the qkv value.
    attn = jnp.zeros((S, H), jnp.float32)
    for h in range(nH):
        q_h = qkv[:, 0 * H + h * dH: 0 * H + (h + 1) * dH]  # (S, dH)
        k_h = qkv[:, 1 * H + h * dH: 1 * H + (h + 1) * dH]
        v_h = qkv[:, 2 * H + h * dH: 2 * H + (h + 1) * dH]

        s = _mxu_dot_t(q_h, k_h) + add_mask                 # (S, S)
        s = s - jnp.max(s, axis=-1, keepdims=True)
        p = jnp.exp(s)
        p = p * pl.reciprocal(jnp.sum(p, axis=-1, keepdims=True), approx=True)

        ctx_h = _mxu_dot(p, v_h)                            # (S, dH)
        attn = attn + _mxu_dot(ctx_h, wo_ref[h * dH:(h + 1) * dH, :])  # (S, H)
    attn = attn + bo_ref[...]

    # ---- residual + LayerNorm ----
    x1 = _layernorm(attn + x, ln1g_ref[...], ln1b_ref[...])

    # ---- FFN (GELU) + residual + LayerNorm ----
    # TODO(synk): tanh-approx GELU; use exact erf GELU to match HF BERT bit-for-bit.
    ff = jax.nn.gelu(_mxu_dot(x1, w1_ref[...]) + b1_ref[...], approximate=True)
    ff = _mxu_dot(ff, w2_ref[...]) + b2_ref[...]
    x2 = _layernorm(ff + x1, ln2g_ref[...], ln2b_ref[...])
    x_sc[...] = x2                                          # carry to next layer

    # ---- pooler + dropout(eval=identity) + classifier epilogue (last layer) ----
    @pl.when(l == n_layers - 1)
    def _():
        cls = x2[0:1, :]                                    # [CLS] row, (1, H)
        pooled = jnp.tanh(_mxu_dot(cls, pw_ref[...]) + pb_ref[...])
        logits_ref[...] = (_mxu_dot(pooled, cw_ref[...])
                           + cb_ref[...]).astype(logits_ref.dtype)


# ------------------------------ kernel wrapper -------------------------------

def bert_classifier_forward(kp, token_ids, valid_length, segment_ids,
                            *, nH, num_classes):
    B, S = token_ids.shape
    H = kp["tok_emb"].shape[1]
    dH = H // nH
    L = kp["wqkv"].shape[0]
    FF = kp["w1"].shape[2]
    Cp = kp["cls_w_pad"].shape[1]

    # Embedding gathers stay in plain JAX (data-dependent gather); everything
    # after them runs in ONE fused Pallas kernel.
    tok_e = kp["tok_emb"][token_ids]                        # (B, S, H) f32
    seg_e = kp["seg_emb"][segment_ids.astype(jnp.int32)]    # (B, S, H) f32
    pos_e = kp["pos_emb"][:S]                               # (S, H)   f32

    per_b = lambda b, l, vl: (b, 0, 0)      # per-batch block (squeezed lead dim)
    per_l = lambda b, l, vl: (l, 0, 0)      # per-layer stacked weights
    shared = lambda b, l, vl: (0, 0)        # layer/batch-invariant 2-D arrays

    grid_spec = pltpu.PrefetchScalarGridSpec(
        num_scalar_prefetch=1,
        grid=(B, L),                                        # layer axis innermost
        in_specs=[
            pl.BlockSpec((None, S, H), per_b),              # tok_e
            pl.BlockSpec((None, S, H), per_b),              # seg_e
            pl.BlockSpec((S, H), shared),                   # pos_e
            pl.BlockSpec((1, H), shared),                   # emb_ln_g
            pl.BlockSpec((1, H), shared),                   # emb_ln_b
            pl.BlockSpec((None, H, 3 * H), per_l),          # wqkv   (bf16)
            pl.BlockSpec((None, 1, 3 * H), per_l),          # bqkv
            pl.BlockSpec((None, H, H), per_l),              # wo     (bf16)
            pl.BlockSpec((None, 1, H), per_l),              # bo
            pl.BlockSpec((None, 1, H), per_l),              # ln1_g
            pl.BlockSpec((None, 1, H), per_l),              # ln1_b
            pl.BlockSpec((None, H, FF), per_l),             # w1     (bf16)
            pl.BlockSpec((None, 1, FF), per_l),             # b1
            pl.BlockSpec((None, FF, H), per_l),             # w2     (bf16)
            pl.BlockSpec((None, 1, H), per_l),              # b2
            pl.BlockSpec((None, 1, H), per_l),              # ln2_g
            pl.BlockSpec((None, 1, H), per_l),              # ln2_b
            pl.BlockSpec((H, H), shared),                   # pool_w (bf16)
            pl.BlockSpec((1, H), shared),                   # pool_b
            pl.BlockSpec((H, Cp), shared),                  # cls_w_pad (bf16)
            pl.BlockSpec((1, Cp), shared),                  # cls_b_pad
        ],
        out_specs=pl.BlockSpec((None, 1, Cp), per_b),       # padded logits
        scratch_shapes=[pltpu.VMEM((S, H), jnp.float32)],   # carried activations
    )

    kernel = functools.partial(_bert_kernel, S=S, nH=nH, dH=dH)
    logits_pad = pl.pallas_call(
        kernel,
        out_shape=jax.ShapeDtypeStruct((B, 1, Cp), jnp.float32),
        grid_spec=grid_spec,
        compiler_params=pltpu.CompilerParams(
            dimension_semantics=("parallel", "arbitrary")),
    )(valid_length.astype(jnp.int32),
      tok_e, seg_e, pos_e, kp["emb_ln_g"], kp["emb_ln_b"],
      kp["wqkv"], kp["bqkv"], kp["wo"], kp["bo"],
      kp["ln1_g"], kp["ln1_b"], kp["w1"], kp["b1"], kp["w2"], kp["b2"],
      kp["ln2_g"], kp["ln2_b"],
      kp["pool_w"], kp["pool_b"], kp["cls_w_pad"], kp["cls_b_pad"])

    return logits_pad[:, 0, :num_classes]


# ---------------------------- parameters / model -----------------------------

def init_params(key, vocab=50, type_vocab=2, max_pos=8, H=32, I=64, L=2, C=7):
    """Canonical (PyTorch-like) f32 parameters of the synthetic mini-BERT."""
    keys = jax.random.split(key, 8 + L)
    std = 0.02
    p = {
        "tok_emb": jax.random.normal(keys[0], (vocab, H)) * std,
        "seg_emb": jax.random.normal(keys[1], (type_vocab, H)) * std,
        "pos_emb": jax.random.normal(keys[2], (max_pos, H)) * std,
        "emb_ln_g": jnp.ones((H,), jnp.float32),
        "emb_ln_b": jnp.zeros((H,), jnp.float32),
        "pool_w": jax.random.normal(keys[3], (H, H)) * std,
        "pool_b": jnp.zeros((H,), jnp.float32),
        "cls_w": jax.random.normal(keys[4], (H, C)) * std,
        "cls_b": jnp.zeros((C,), jnp.float32),
        "layers": [],
    }
    for l in range(L):
        lk = jax.random.split(keys[8 + l], 4)
        p["layers"].append({
            "wqkv": jax.random.normal(lk[0], (H, 3 * H)) * std,
            "bqkv": jnp.zeros((3 * H,), jnp.float32),
            "wo": jax.random.normal(lk[1], (H, H)) * std,
            "bo": jnp.zeros((H,), jnp.float32),
            "w1": jax.random.normal(lk[2], (H, I)) * std,
            "b1": jnp.zeros((I,), jnp.float32),
            "w2": jax.random.normal(lk[3], (I, H)) * std,
            "b2": jnp.zeros((H,), jnp.float32),
            "ln1_g": jnp.ones((H,), jnp.float32), "ln1_b": jnp.zeros((H,), jnp.float32),
            "ln2_g": jnp.ones((H,), jnp.float32), "ln2_b": jnp.zeros((H,), jnp.float32),
        })
    return p


def prepare_kernel_params(p, *, nH, c_pad=128):
    """Kernel-ready params: stacked per-layer weights, bf16 matmul weights,
    1/sqrt(dH) folded into the Q projection, lane-padded classifier."""
    H = p["tok_emb"].shape[1]
    dH = H // nH
    scale = 1.0 / float(dH) ** 0.5
    C = p["cls_w"].shape[1]
    FF = p["layers"][0]["w1"].shape[1]

    def stack(name):
        return jnp.stack([lp[name] for lp in p["layers"]])

    wqkv = stack("wqkv")                    # (L, H, 3H)
    bqkv = stack("bqkv")                    # (L, 3H)
    wqkv = wqkv.at[:, :, :H].multiply(scale)   # fold attention scale into Q
    bqkv = bqkv.at[:, :H].multiply(scale)

    return {
        "tok_emb": p["tok_emb"],
        "seg_emb": p["seg_emb"],
        "pos_emb": p["pos_emb"],
        "emb_ln_g": p["emb_ln_g"].reshape(1, H),
        "emb_ln_b": p["emb_ln_b"].reshape(1, H),
        "wqkv": wqkv.astype(jnp.bfloat16),
        "bqkv": bqkv.reshape(-1, 1, 3 * H),
        "wo": stack("wo").astype(jnp.bfloat16),
        "bo": stack("bo").reshape(-1, 1, H),
        "ln1_g": stack("ln1_g").reshape(-1, 1, H),
        "ln1_b": stack("ln1_b").reshape(-1, 1, H),
        "w1": stack("w1").astype(jnp.bfloat16),
        "b1": stack("b1").reshape(-1, 1, FF),
        "w2": stack("w2").astype(jnp.bfloat16),
        "b2": stack("b2").reshape(-1, 1, H),
        "ln2_g": stack("ln2_g").reshape(-1, 1, H),
        "ln2_b": stack("ln2_b").reshape(-1, 1, H),
        "pool_w": p["pool_w"].astype(jnp.bfloat16),
        "pool_b": p["pool_b"].reshape(1, H),
        "cls_w_pad": jnp.pad(p["cls_w"], ((0, 0), (0, c_pad - C))).astype(jnp.bfloat16),
        "cls_b_pad": jnp.pad(p["cls_b"], (0, c_pad - C)).reshape(1, c_pad),
    }


# ---------------------------------- driver -----------------------------------

if __name__ == "__main__":
    key = jax.random.PRNGKey(0)
    B, S, H, nH, C, vocab, L = 2, 8, 32, 4, 7, 50, 2

    pkey, dkey = jax.random.split(key)
    params = init_params(pkey, vocab=vocab, max_pos=S, H=H, L=L, C=C)
    kparams = prepare_kernel_params(params, nH=nH)

    k1, _ = jax.random.split(dkey)
    token_ids = jax.random.randint(k1, (B, S), 0, vocab, dtype=jnp.int32)
    valid_length = jnp.array([5, 8], dtype=jnp.int32)
    segment_ids = jnp.zeros((B, S), dtype=jnp.int32)

    fwd = jax.jit(functools.partial(bert_classifier_forward, nH=nH,
                                    num_classes=C))
    logits = fwd(kparams, token_ids, valid_length, segment_ids)
    jax.block_until_ready(logits)

    assert logits.shape == (B, C), logits.shape
    assert bool(jnp.all(jnp.isfinite(logits)))
    print("KERNEL_OK")
</pallas_src>

<mosaic_0001>
module attributes {stable_mosaic.version = 11 : i64} {
  func.func @_bert_kernel(%arg0: i32, %arg1: i32, %arg2: memref<2xi32, #tpu.memory_space<smem>>, %arg3: memref<1x8x32xf32, #tpu.memory_space<vmem>>, %arg4: memref<1x8x32xf32, #tpu.memory_space<vmem>>, %arg5: memref<8x32xf32, #tpu.memory_space<vmem>>, %arg6: memref<1x32xf32, #tpu.memory_space<vmem>>, %arg7: memref<1x32xf32, #tpu.memory_space<vmem>>, %arg8: memref<1x32x96xbf16, #tpu.memory_space<vmem>>, %arg9: memref<1x1x96xf32, #tpu.memory_space<vmem>>, %arg10: memref<1x32x32xbf16, #tpu.memory_space<vmem>>, %arg11: memref<1x1x32xf32, #tpu.memory_space<vmem>>, %arg12: memref<1x1x32xf32, #tpu.memory_space<vmem>>, %arg13: memref<1x1x32xf32, #tpu.memory_space<vmem>>, %arg14: memref<1x32x64xbf16, #tpu.memory_space<vmem>>, %arg15: memref<1x1x64xf32, #tpu.memory_space<vmem>>, %arg16: memref<1x64x32xbf16, #tpu.memory_space<vmem>>, %arg17: memref<1x1x32xf32, #tpu.memory_space<vmem>>, %arg18: memref<1x1x32xf32, #tpu.memory_space<vmem>>, %arg19: memref<1x1x32xf32, #tpu.memory_space<vmem>>, %arg20: memref<32x32xbf16, #tpu.memory_space<vmem>>, %arg21: memref<1x32xf32, #tpu.memory_space<vmem>>, %arg22: memref<32x128xbf16, #tpu.memory_space<vmem>>, %arg23: memref<1x128xf32, #tpu.memory_space<vmem>>, %arg24: memref<1x1x128xf32, #tpu.memory_space<vmem>>, %arg25: memref<8x32xf32, #tpu.memory_space<vmem>>) attributes {dimension_semantics = [#tpu.dimension_semantics<parallel>, #tpu.dimension_semantics<arbitrary>], iteration_bounds = array<i64: 2, 2>, scalar_prefetch = 1 : i64, scratch_operands = 1 : i64, tpu.core_type = #tpu.core_type<tc>, window_params = [{transform_indices = @transform_0, window_bounds = array<i64: 1, 8, 32>}, {transform_indices = @transform_1, window_bounds = array<i64: 1, 8, 32>}, {pipeline_mode = #tpu.pipeline_mode<synchronous>, transform_indices = @transform_2, window_bounds = array<i64: 8, 32>}, {pipeline_mode = #tpu.pipeline_mode<synchronous>, transform_indices = @transform_3, window_bounds = array<i64: 1, 32>}, {pipeline_mode = #tpu.pipeline_mode<synchronous>, transform_indices = @transform_4, window_bounds = array<i64: 1, 32>}, {transform_indices = @transform_5, window_bounds = array<i64: 1, 32, 96>}, {transform_indices = @transform_6, window_bounds = array<i64: 1, 1, 96>}, {transform_indices = @transform_7, window_bounds = array<i64: 1, 32, 32>}, {transform_indices = @transform_8, window_bounds = array<i64: 1, 1, 32>}, {transform_indices = @transform_9, window_bounds = array<i64: 1, 1, 32>}, {transform_indices = @transform_10, window_bounds = array<i64: 1, 1, 32>}, {transform_indices = @transform_11, window_bounds = array<i64: 1, 32, 64>}, {transform_indices = @transform_12, window_bounds = array<i64: 1, 1, 64>}, {transform_indices = @transform_13, window_bounds = array<i64: 1, 64, 32>}, {transform_indices = @transform_14, window_bounds = array<i64: 1, 1, 32>}, {transform_indices = @transform_15, window_bounds = array<i64: 1, 1, 32>}, {transform_indices = @transform_16, window_bounds = array<i64: 1, 1, 32>}, {pipeline_mode = #tpu.pipeline_mode<synchronous>, transform_indices = @transform_17, window_bounds = array<i64: 32, 32>}, {pipeline_mode = #tpu.pipeline_mode<synchronous>, transform_indices = @transform_18, window_bounds = array<i64: 1, 32>}, {pipeline_mode = #tpu.pipeline_mode<synchronous>, transform_indices = @transform_19, window_bounds = array<i64: 32, 128>}, {pipeline_mode = #tpu.pipeline_mode<synchronous>, transform_indices = @transform_20, window_bounds = array<i64: 1, 128>}, {transform_indices = @transform_21, window_bounds = array<i64: 1, 1, 128>}]} {
    %c0_i32 = arith.constant 0 : i32
    %0 = arith.cmpi eq, %arg1, %c0_i32 : i32
    %1 = arith.extui %0 : i1 to i32
    %c0_i32_0 = arith.constant 0 : i32
    %2 = arith.cmpi ne, %1, %c0_i32_0 : i32
    scf.if %2 {
      %c0_86 = arith.constant 0 : index
      %c0_87 = arith.constant 0 : index
      %c0_88 = arith.constant 0 : index
      %216 = vector.load %arg3[%c0_86, %c0_87, %c0_88] : memref<1x8x32xf32, #tpu.memory_space<vmem>>, vector<1x8x32xf32>
      %217 = vector.shape_cast %216 : vector<1x8x32xf32> to vector<8x32xf32>
      %c0_89 = arith.constant 0 : index
      %c0_90 = arith.constant 0 : index
      %c0_91 = arith.constant 0 : index
      %218 = vector.load %arg4[%c0_89, %c0_90, %c0_91] : memref<1x8x32xf32, #tpu.memory_space<vmem>>, vector<1x8x32xf32>
      %219 = vector.shape_cast %218 : vector<1x8x32xf32> to vector<8x32xf32>
      %220 = arith.addf %217, %219 : vector<8x32xf32>
      %c0_92 = arith.constant 0 : index
      %c0_93 = arith.constant 0 : index
      %221 = vector.load %arg5[%c0_92, %c0_93] : memref<8x32xf32, #tpu.memory_space<vmem>>, vector<8x32xf32>
      %222 = arith.addf %220, %221 : vector<8x32xf32>
      %c0_94 = arith.constant 0 : index
      %c0_95 = arith.constant 0 : index
      %223 = vector.load %arg6[%c0_94, %c0_95] : memref<1x32xf32, #tpu.memory_space<vmem>>, vector<1x32xf32>
      %c0_96 = arith.constant 0 : index
      %c0_97 = arith.constant 0 : index
      %224 = vector.load %arg7[%c0_96, %c0_97] : memref<1x32xf32, #tpu.memory_space<vmem>>, vector<1x32xf32>
      %cst_98 = arith.constant dense<0.000000e+00> : vector<8xf32>
      %225 = vector.multi_reduction <add>, %222, %cst_98 [1] : vector<8x32xf32> to vector<8xf32>
      %226 = vector.shape_cast %225 : vector<8xf32> to vector<8x1xf32>
      %cst_99 = arith.constant 3.200000e+01 : f32
      %227 = vector.broadcast %cst_99 : f32 to vector<8x1xf32>
      %228 = arith.divf %226, %227 : vector<8x1xf32>
      %229 = vector.broadcast %228 : vector<8x1xf32> to vector<8x32xf32>
      %230 = arith.subf %222, %229 : vector<8x32xf32>
      %231 = arith.mulf %230, %230 : vector<8x32xf32>
      %cst_100 = arith.constant dense<0.000000e+00> : vector<8xf32>
      %232 = vector.multi_reduction <add>, %231, %cst_100 [1] : vector<8x32xf32> to vector<8xf32>
      %233 = vector.shape_cast %232 : vector<8xf32> to vector<8x1xf32>
      %cst_101 = arith.constant 3.200000e+01 : f32
      %234 = vector.broadcast %cst_101 : f32 to vector<8x1xf32>
      %235 = arith.divf %233, %234 : vector<8x1xf32>
      %236 = vector.broadcast %228 : vector<8x1xf32> to vector<8x32xf32>
      %237 = arith.subf %222, %236 : vector<8x32xf32>
      %cst_102 = arith.constant 9.99999996E-13 : f32
      %238 = vector.broadcast %cst_102 : f32 to vector<8x1xf32>
      %239 = arith.addf %235, %238 : vector<8x1xf32>
      %240 = math.rsqrt %239 : vector<8x1xf32>
      %241 = vector.broadcast %240 : vector<8x1xf32> to vector<8x32xf32>
      %242 = arith.mulf %237, %241 : vector<8x32xf32>
      %243 = vector.broadcast %223 : vector<1x32xf32> to vector<8x32xf32>
      %244 = arith.mulf %242, %243 : vector<8x32xf32>
      %245 = vector.broadcast %224 : vector<1x32xf32> to vector<8x32xf32>
      %246 = arith.addf %244, %245 : vector<8x32xf32>
      %c0_103 = arith.constant 0 : index
      %c0_104 = arith.constant 0 : index
      %247 = vector.load %arg25[%c0_103, %c0_104] : memref<8x32xf32, #tpu.memory_space<vmem>>, vector<8x32xf32>
      tpu.vector_store %arg25[%c0_103, %c0_104], %246 {strides = array<i32>} : memref<8x32xf32, #tpu.memory_space<vmem>>, vector<8x32xf32>,
    } else {
    }
    %c0 = arith.constant 0 : index
    %c0_1 = arith.constant 0 : index
    %3 = vector.load %arg25[%c0, %c0_1] : memref<8x32xf32, #tpu.memory_space<vmem>>, vector<8x32xf32>
    %4 = arith.index_cast %arg0 : i32 to index
    %5 = memref.load %arg2[%4] : memref<2xi32, #tpu.memory_space<smem>>
    %6 = tpu.iota {dimensions = array<i32: 1>} : vector<1x8xi32>
    %7 = vector.broadcast %5 : i32 to vector<1x8xi32>
    %8 = arith.cmpi slt, %6, %7 : vector<1x8xi32>
    %cst = arith.constant 0.000000e+00 : f32
    %cst_2 = arith.constant -1.000000e+04 : f32
    %9 = vector.broadcast %cst : f32 to vector<1x8xf32>
    %10 = vector.broadcast %cst_2 : f32 to vector<1x8xf32>
    %11 = arith.select %8, %9, %10 : vector<1x8xi1>, vector<1x8xf32>
    %c0_3 = arith.constant 0 : index
    %c0_4 = arith.constant 0 : index
    %c0_5 = arith.constant 0 : index
    %12 = vector.load %arg8[%c0_3, %c0_4, %c0_5] : memref<1x32x96xbf16, #tpu.memory_space<vmem>>, vector<1x32x96xbf16>
    %13 = vector.shape_cast %12 : vector<1x32x96xbf16> to vector<32x96xbf16>
    %14 = arith.truncf %3 : vector<8x32xf32> to vector<8x32xbf16>
    %cst_6 = arith.constant dense<0.000000e+00> : vector<8x96xf32>
    %15 = tpu.matmul %14, %13, %cst_6 {dimension_numbers = #tpu.dot_dimension_numbers<[1], [0], [0], [1], [0, 0, 1, 1], [], []>} : vector<8x32xbf16>, vector<32x96xbf16>, vector<8x96xf32> -> vector<8x96xf32>
    %c0_7 = arith.constant 0 : index
    %c0_8 = arith.constant 0 : index
    %c0_9 = arith.constant 0 : index
    %16 = vector.load %arg9[%c0_7, %c0_8, %c0_9] : memref<1x1x96xf32, #tpu.memory_space<vmem>>, vector<1x1x96xf32>
    %17 = vector.shape_cast %16 : vector<1x1x96xf32> to vector<1x96xf32>
    %18 = vector.broadcast %17 : vector<1x96xf32> to vector<8x96xf32>
    %19 = arith.addf %15, %18 : vector<8x96xf32>
    %cst_10 = arith.constant 0.000000e+00 : f32
    %20 = vector.broadcast %cst_10 : f32 to vector<8x32xf32>
    %21 = vector.extract_strided_slice %19 {offsets = [0, 0], sizes = [8, 8], strides = [1, 1]} : vector<8x96xf32> to vector<8x8xf32>
    %22 = vector.extract_strided_slice %19 {offsets = [0, 32], sizes = [8, 8], strides = [1, 1]} : vector<8x96xf32> to vector<8x8xf32>
    %23 = vector.extract_strided_slice %19 {offsets = [0, 64], sizes = [8, 8], strides = [1, 1]} : vector<8x96xf32> to vector<8x8xf32>
    %24 = arith.truncf %21 : vector<8x8xf32> to vector<8x8xbf16>
    %25 = arith.truncf %22 : vector<8x8xf32> to vector<8x8xbf16>
    %cst_11 = arith.constant dense<0.000000e+00> : vector<8x8xf32>
    %26 = tpu.matmul %24, %25, %cst_11 {dimension_numbers = #tpu.dot_dimension_numbers<[1], [1], [0], [0], [0, 0, 1, 0], [], []>} : vector<8x8xbf16>, vector<8x8xbf16>, vector<8x8xf32> -> vector<8x8xf32>
    %27 = vector.broadcast %11 : vector<1x8xf32> to vector<8x8xf32>
    %28 = arith.addf %26, %27 : vector<8x8xf32>
    %cst_12 = arith.constant dense<0xFF800000> : vector<8xf32>
    %29 = vector.multi_reduction <maximumf>, %28, %cst_12 [1] : vector<8x8xf32> to vector<8xf32>
    %30 = vector.shape_cast %29 : vector<8xf32> to vector<8x1xf32>
    %31 = vector.broadcast %30 : vector<8x1xf32> to vector<8x8xf32>
    %32 = arith.subf %28, %31 : vector<8x8xf32>
    %33 = math.exp %32 : vector<8x8xf32>
    %cst_13 = arith.constant dense<0.000000e+00> : vector<8xf32>
    %34 = vector.multi_reduction <add>, %33, %cst_13 [1] : vector<8x8xf32> to vector<8xf32>
    %35 = vector.shape_cast %34 : vector<8xf32> to vector<8x1xf32>
    %36 = tpu.reciprocal %35 {approx = true} : vector<8x1xf32> -> vector<8x1xf32>
    %37 = vector.broadcast %36 : vector<8x1xf32> to vector<8x8xf32>
    %38 = arith.mulf %33, %37 : vector<8x8xf32>
    %39 = arith.truncf %38 : vector<8x8xf32> to vector<8x8xbf16>
    %40 = arith.truncf %23 : vector<8x8xf32> to vector<8x8xbf16>
    %cst_14 = arith.constant dense<0.000000e+00> : vector<8x8xf32>
    %41 = tpu.matmul %39, %40, %cst_14 {dimension_numbers = #tpu.dot_dimension_numbers<[1], [0], [0], [1], [0, 0, 1, 1], [], []>} : vector<8x8xbf16>, vector<8x8xbf16>, vector<8x8xf32> -> vector<8x8xf32>
    %c0_15 = arith.constant 0 : index
    %c0_16 = arith.constant 0 : index
    %c0_17 = arith.constant 0 : index
    %42 = vector.load %arg10[%c0_15, %c0_16, %c0_17] : memref<1x32x32xbf16, #tpu.memory_space<vmem>>, vector<1x8x32xbf16>
    %43 = vector.shape_cast %42 : vector<1x8x32xbf16> to vector<8x32xbf16>
    %44 = arith.truncf %41 : vector<8x8xf32> to vector<8x8xbf16>
    %cst_18 = arith.constant dense<0.000000e+00> : vector<8x32xf32>
    %45 = tpu.matmul %44, %43, %cst_18 {dimension_numbers = #tpu.dot_dimension_numbers<[1], [0], [0], [1], [0, 0, 1, 1], [], []>} : vector<8x8xbf16>, vector<8x32xbf16>, vector<8x32xf32> -> vector<8x32xf32>
    %46 = arith.addf %20, %45 : vector<8x32xf32>
    %47 = vector.extract_strided_slice %19 {offsets = [0, 8], sizes = [8, 8], strides = [1, 1]} : vector<8x96xf32> to vector<8x8xf32>
    %48 = vector.extract_strided_slice %19 {offsets = [0, 40], sizes = [8, 8], strides = [1, 1]} : vector<8x96xf32> to vector<8x8xf32>
    %49 = vector.extract_strided_slice %19 {offsets = [0, 72], sizes = [8, 8], strides = [1, 1]} : vector<8x96xf32> to vector<8x8xf32>
    %50 = arith.truncf %47 : vector<8x8xf32> to vector<8x8xbf16>
    %51 = arith.truncf %48 : vector<8x8xf32> to vector<8x8xbf16>
    %cst_19 = arith.constant dense<0.000000e+00> : vector<8x8xf32>
    %52 = tpu.matmul %50, %51, %cst_19 {dimension_numbers = #tpu.dot_dimension_numbers<[1], [1], [0], [0], [0, 0, 1, 0], [], []>} : vector<8x8xbf16>, vector<8x8xbf16>, vector<8x8xf32> -> vector<8x8xf32>
    %53 = vector.broadcast %11 : vector<1x8xf32> to vector<8x8xf32>
    %54 = arith.addf %52, %53 : vector<8x8xf32>
    %cst_20 = arith.constant dense<0xFF800000> : vector<8xf32>
    %55 = vector.multi_reduction <maximumf>, %54, %cst_20 [1] : vector<8x8xf32> to vector<8xf32>
    %56 = vector.shape_cast %55 : vector<8xf32> to vector<8x1xf32>
    %57 = vector.broadcast %56 : vector<8x1xf32> to vector<8x8xf32>
    %58 = arith.subf %54, %57 : vector<8x8xf32>
    %59 = math.exp %58 : vector<8x8xf32>
    %cst_21 = arith.constant dense<0.000000e+00> : vector<8xf32>
    %60 = vector.multi_reduction <add>, %59, %cst_21 [1] : vector<8x8xf32> to vector<8xf32>
    %61 = vector.shape_cast %60 : vector<8xf32> to vector<8x1xf32>
    %62 = tpu.reciprocal %61 {approx = true} : vector<8x1xf32> -> vector<8x1xf32>
    %63 = vector.broadcast %62 : vector<8x1xf32> to vector<8x8xf32>
    %64 = arith.mulf %59, %63 : vector<8x8xf32>
    %65 = arith.truncf %64 : vector<8x8xf32> to vector<8x8xbf16>
    %66 = arith.truncf %49 : vector<8x8xf32> to vector<8x8xbf16>
    %cst_22 = arith.constant dense<0.000000e+00> : vector<8x8xf32>
    %67 = tpu.matmul %65, %66, %cst_22 {dimension_numbers = #tpu.dot_dimension_numbers<[1], [0], [0], [1], [0, 0, 1, 1], [], []>} : vector<8x8xbf16>, vector<8x8xbf16>, vector<8x8xf32> -> vector<8x8xf32>
    %c0_23 = arith.constant 0 : index
    %c8 = arith.constant 8 : index
    %c0_24 = arith.constant 0 : index
    %68 = vector.load %arg10[%c0_23, %c8, %c0_24] : memref<1x32x32xbf16, #tpu.memory_space<vmem>>, vector<1x8x32xbf16>
    %69 = vector.shape_cast %68 : vector<1x8x32xbf16> to vector<8x32xbf16>
    %70 = arith.truncf %67 : vector<8x8xf32> to vector<8x8xbf16>
    %cst_25 = arith.constant dense<0.000000e+00> : vector<8x32xf32>
    %71 = tpu.matmul %70, %69, %cst_25 {dimension_numbers = #tpu.dot_dimension_numbers<[1], [0], [0], [1], [0, 0, 1, 1], [], []>} : vector<8x8xbf16>, vector<8x32xbf16>, vector<8x32xf32> -> vector<8x32xf32>
    %72 = arith.addf %46, %71 : vector<8x32xf32>
    %73 = vector.extract_strided_slice %19 {offsets = [0, 16], sizes = [8, 8], strides = [1, 1]} : vector<8x96xf32> to vector<8x8xf32>
    %74 = vector.extract_strided_slice %19 {offsets = [0, 48], sizes = [8, 8], strides = [1, 1]} : vector<8x96xf32> to vector<8x8xf32>
    %75 = vector.extract_strided_slice %19 {offsets = [0, 80], sizes = [8, 8], strides = [1, 1]} : vector<8x96xf32> to vector<8x8xf32>
    %76 = arith.truncf %73 : vector<8x8xf32> to vector<8x8xbf16>
    %77 = arith.truncf %74 : vector<8x8xf32> to vector<8x8xbf16>
    %cst_26 = arith.constant dense<0.000000e+00> : vector<8x8xf32>
    %78 = tpu.matmul %76, %77, %cst_26 {dimension_numbers = #tpu.dot_dimension_numbers<[1], [1], [0], [0], [0, 0, 1, 0], [], []>} : vector<8x8xbf16>, vector<8x8xbf16>, vector<8x8xf32> -> vector<8x8xf32>
    %79 = vector.broadcast %11 : vector<1x8xf32> to vector<8x8xf32>
    %80 = arith.addf %78, %79 : vector<8x8xf32>
    %cst_27 = arith.constant dense<0xFF800000> : vector<8xf32>
    %81 = vector.multi_reduction <maximumf>, %80, %cst_27 [1] : vector<8x8xf32> to vector<8xf32>
    %82 = vector.shape_cast %81 : vector<8xf32> to vector<8x1xf32>
    %83 = vector.broadcast %82 : vector<8x1xf32> to vector<8x8xf32>
    %84 = arith.subf %80, %83 : vector<8x8xf32>
    %85 = math.exp %84 : vector<8x8xf32>
    %cst_28 = arith.constant dense<0.000000e+00> : vector<8xf32>
    %86 = vector.multi_reduction <add>, %85, %cst_28 [1] : vector<8x8xf32> to vector<8xf32>
    %87 = vector.shape_cast %86 : vector<8xf32> to vector<8x1xf32>
    %88 = tpu.reciprocal %87 {approx = true} : vector<8x1xf32> -> vector<8x1xf32>
    %89 = vector.broadcast %88 : vector<8x1xf32> to vector<8x8xf32>
    %90 = arith.mulf %85, %89 : vector<8x8xf32>
    %91 = arith.truncf %90 : vector<8x8xf32> to vector<8x8xbf16>
    %92 = arith.truncf %75 : vector<8x8xf32> to vector<8x8xbf16>
    %cst_29 = arith.constant dense<0.000000e+00> : vector<8x8xf32>
    %93 = tpu.matmul %91, %92, %cst_29 {dimension_numbers = #tpu.dot_dimension_numbers<[1], [0], [0], [1], [0, 0, 1, 1], [], []>} : vector<8x8xbf16>, vector<8x8xbf16>, vector<8x8xf32> -> vector<8x8xf32>
    %c0_30 = arith.constant 0 : index
    %c16 = arith.constant 16 : index
    %c0_31 = arith.constant 0 : index
    %94 = vector.load %arg10[%c0_30, %c16, %c0_31] : memref<1x32x32xbf16, #tpu.memory_space<vmem>>, vector<1x8x32xbf16>
    %95 = vector.shape_cast %94 : vector<1x8x32xbf16> to vector<8x32xbf16>
    %96 = arith.truncf %93 : vector<8x8xf32> to vector<8x8xbf16>
    %cst_32 = arith.constant dense<0.000000e+00> : vector<8x32xf32>
    %97 = tpu.matmul %96, %95, %cst_32 {dimension_numbers = #tpu.dot_dimension_numbers<[1], [0], [0], [1], [0, 0, 1, 1], [], []>} : vector<8x8xbf16>, vector<8x32xbf16>, vector<8x32xf32> -> vector<8x32xf32>
    %98 = arith.addf %72, %97 : vector<8x32xf32>
    %99 = vector.extract_strided_slice %19 {offsets = [0, 24], sizes = [8, 8], strides = [1, 1]} : vector<8x96xf32> to vector<8x8xf32>
    %100 = vector.extract_strided_slice %19 {offsets = [0, 56], sizes = [8, 8], strides = [1, 1]} : vector<8x96xf32> to vector<8x8xf32>
    %101 = vector.extract_strided_slice %19 {offsets = [0, 88], sizes = [8, 8], strides = [1, 1]} : vector<8x96xf32> to vector<8x8xf32>
    %102 = arith.truncf %99 : vector<8x8xf32> to vector<8x8xbf16>
    %103 = arith.truncf %100 : vector<8x8xf32> to vector<8x8xbf16>
    %cst_33 = arith.constant dense<0.000000e+00> : vector<8x8xf32>
    %104 = tpu.matmul %102, %103, %cst_33 {dimension_numbers = #tpu.dot_dimension_numbers<[1], [1], [0], [0], [0, 0, 1, 0], [], []>} : vector<8x8xbf16>, vector<8x8xbf16>, vector<8x8xf32> -> vector<8x8xf32>
    %105 = vector.broadcast %11 : vector<1x8xf32> to vector<8x8xf32>
    %106 = arith.addf %104, %105 : vector<8x8xf32>
    %cst_34 = arith.constant dense<0xFF800000> : vector<8xf32>
    %107 = vector.multi_reduction <maximumf>, %106, %cst_34 [1] : vector<8x8xf32> to vector<8xf32>
    %108 = vector.shape_cast %107 : vector<8xf32> to vector<8x1xf32>
    %109 = vector.broadcast %108 : vector<8x1xf32> to vector<8x8xf32>
    %110 = arith.subf %106, %109 : vector<8x8xf32>
    %111 = math.exp %110 : vector<8x8xf32>
    %cst_35 = arith.constant dense<0.000000e+00> : vector<8xf32>
    %112 = vector.multi_reduction <add>, %111, %cst_35 [1] : vector<8x8xf32> to vector<8xf32>
    %113 = vector.shape_cast %112 : vector<8xf32> to vector<8x1xf32>
    %114 = tpu.reciprocal %113 {approx = true} : vector<8x1xf32> -> vector<8x1xf32>
    %115 = vector.broadcast %114 : vector<8x1xf32> to vector<8x8xf32>
    %116 = arith.mulf %111, %115 : vector<8x8xf32>
    %117 = arith.truncf %116 : vector<8x8xf32> to vector<8x8xbf16>
    %118 = arith.truncf %101 : vector<8x8xf32> to vector<8x8xbf16>
    %cst_36 = arith.constant dense<0.000000e+00> : vector<8x8xf32>
    %119 = tpu.matmul %117, %118, %cst_36 {dimension_numbers = #tpu.dot_dimension_numbers<[1], [0], [0], [1], [0, 0, 1, 1], [], []>} : vector<8x8xbf16>, vector<8x8xbf16>, vector<8x8xf32> -> vector<8x8xf32>
    %c0_37 = arith.constant 0 : index
    %c24 = arith.constant 24 : index
    %c0_38 = arith.constant 0 : index
    %120 = vector.load %arg10[%c0_37, %c24, %c0_38] : memref<1x32x32xbf16, #tpu.memory_space<vmem>>, vector<1x8x32xbf16>
    %121 = vector.shape_cast %120 : vector<1x8x32xbf16> to vector<8x32xbf16>
    %122 = arith.truncf %119 : vector<8x8xf32> to vector<8x8xbf16>
    %cst_39 = arith.constant dense<0.000000e+00> : vector<8x32xf32>
    %123 = tpu.matmul %122, %121, %cst_39 {dimension_numbers = #tpu.dot_dimension_numbers<[1], [0], [0], [1], [0, 0, 1, 1], [], []>} : vector<8x8xbf16>, vector<8x32xbf16>, vector<8x32xf32> -> vector<8x32xf32>
    %124 = arith.addf %98, %123 : vector<8x32xf32>
    %c0_40 = arith.constant 0 : index
    %c0_41 = arith.constant 0 : index
    %c0_42 = arith.constant 0 : index
    %125 = vector.load %arg11[%c0_40, %c0_41, %c0_42] : memref<1x1x32xf32, #tpu.memory_space<vmem>>, vector<1x1x32xf32>
    %126 = vector.shape_cast %125 : vector<1x1x32xf32> to vector<1x32xf32>
    %127 = vector.broadcast %126 : vector<1x32xf32> to vector<8x32xf32>
    %128 = arith.addf %124, %127 : vector<8x32xf32>
    %129 = arith.addf %128, %3 : vector<8x32xf32>
    %c0_43 = arith.constant 0 : index
    %c0_44 = arith.constant 0 : index
    %c0_45 = arith.constant 0 : index
    %130 = vector.load %arg12[%c0_43, %c0_44, %c0_45] : memref<1x1x32xf32, #tpu.memory_space<vmem>>, vector<1x1x32xf32>
    %131 = vector.shape_cast %130 : vector<1x1x32xf32> to vector<1x32xf32>
    %c0_46 = arith.constant 0 : index
    %c0_47 = arith.constant 0 : index
    %c0_48 = arith.constant 0 : index
    %132 = vector.load %arg13[%c0_46, %c0_47, %c0_48] : memref<1x1x32xf32, #tpu.memory_space<vmem>>, vector<1x1x32xf32>
    %133 = vector.shape_cast %132 : vector<1x1x32xf32> to vector<1x32xf32>
    %cst_49 = arith.constant dense<0.000000e+00> : vector<8xf32>
    %134 = vector.multi_reduction <add>, %129, %cst_49 [1] : vector<8x32xf32> to vector<8xf32>
    %135 = vector.shape_cast %134 : vector<8xf32> to vector<8x1xf32>
    %cst_50 = arith.constant 3.200000e+01 : f32
    %136 = vector.broadcast %cst_50 : f32 to vector<8x1xf32>
    %137 = arith.divf %135, %136 : vector<8x1xf32>
    %138 = vector.broadcast %137 : vector<8x1xf32> to vector<8x32xf32>
    %139 = arith.subf %129, %138 : vector<8x32xf32>
    %140 = arith.mulf %139, %139 : vector<8x32xf32>
    %cst_51 = arith.constant dense<0.000000e+00> : vector<8xf32>
    %141 = vector.multi_reduction <add>, %140, %cst_51 [1] : vector<8x32xf32> to vector<8xf32>
    %142 = vector.shape_cast %141 : vector<8xf32> to vector<8x1xf32>
    %cst_52 = arith.constant 3.200000e+01 : f32
    %143 = vector.broadcast %cst_52 : f32 to vector<8x1xf32>
    %144 = arith.divf %142, %143 : vector<8x1xf32>
    %145 = vector.broadcast %137 : vector<8x1xf32> to vector<8x32xf32>
    %146 = arith.subf %129, %145 : vector<8x32xf32>
    %cst_53 = arith.constant 9.99999996E-13 : f32
    %147 = vector.broadcast %cst_53 : f32 to vector<8x1xf32>
    %148 = arith.addf %144, %147 : vector<8x1xf32>
    %149 = math.rsqrt %148 : vector<8x1xf32>
    %150 = vector.broadcast %149 : vector<8x1xf32> to vector<8x32xf32>
    %151 = arith.mulf %146, %150 : vector<8x32xf32>
    %152 = vector.broadcast %131 : vector<1x32xf32> to vector<8x32xf32>
    %153 = arith.mulf %151, %152 : vector<8x32xf32>
    %154 = vector.broadcast %133 : vector<1x32xf32> to vector<8x32xf32>
    %155 = arith.addf %153, %154 : vector<8x32xf32>
    %c0_54 = arith.constant 0 : index
    %c0_55 = arith.constant 0 : index
    %c0_56 = arith.constant 0 : index
    %156 = vector.load %arg14[%c0_54, %c0_55, %c0_56] : memref<1x32x64xbf16, #tpu.memory_space<vmem>>, vector<1x32x64xbf16>
    %157 = vector.shape_cast %156 : vector<1x32x64xbf16> to vector<32x64xbf16>
    %158 = arith.truncf %155 : vector<8x32xf32> to vector<8x32xbf16>
    %cst_57 = arith.constant dense<0.000000e+00> : vector<8x64xf32>
    %159 = tpu.matmul %158, %157, %cst_57 {dimension_numbers = #tpu.dot_dimension_numbers<[1], [0], [0], [1], [0, 0, 1, 1], [], []>} : vector<8x32xbf16>, vector<32x64xbf16>, vector<8x64xf32> -> vector<8x64xf32>
    %c0_58 = arith.constant 0 : index
    %c0_59 = arith.constant 0 : index
    %c0_60 = arith.constant 0 : index
    %160 = vector.load %arg15[%c0_58, %c0_59, %c0_60] : memref<1x1x64xf32, #tpu.memory_space<vmem>>, vector<1x1x64xf32>
    %161 = vector.shape_cast %160 : vector<1x1x64xf32> to vector<1x64xf32>
    %162 = vector.broadcast %161 : vector<1x64xf32> to vector<8x64xf32>
    %163 = arith.addf %159, %162 : vector<8x64xf32>
    %164 = arith.mulf %163, %163 : vector<8x64xf32>
    %165 = arith.mulf %163, %164 : vector<8x64xf32>
    %cst_61 = arith.constant 4.471500e-02 : f32
    %166 = vector.broadcast %cst_61 : f32 to vector<8x64xf32>
    %167 = arith.mulf %166, %165 : vector<8x64xf32>
    %168 = arith.addf %163, %167 : vector<8x64xf32>
    %cst_62 = arith.constant 0.797884583 : f32
    %169 = vector.broadcast %cst_62 : f32 to vector<8x64xf32>
    %170 = arith.mulf %169, %168 : vector<8x64xf32>
    %171 = math.tanh %170 : vector<8x64xf32>
    %cst_63 = arith.constant 1.000000e+00 : f32
    %172 = vector.broadcast %cst_63 : f32 to vector<8x64xf32>
    %173 = arith.addf %172, %171 : vector<8x64xf32>
    %cst_64 = arith.constant 5.000000e-01 : f32
    %174 = vector.broadcast %cst_64 : f32 to vector<8x64xf32>
    %175 = arith.mulf %174, %173 : vector<8x64xf32>
    %176 = arith.mulf %163, %175 : vector<8x64xf32>
    %c0_65 = arith.constant 0 : index
    %c0_66 = arith.constant 0 : index
    %c0_67 = arith.constant 0 : index
    %177 = vector.load %arg16[%c0_65, %c0_66, %c0_67] : memref<1x64x32xbf16, #tpu.memory_space<vmem>>, vector<1x64x32xbf16>
    %178 = vector.shape_cast %177 : vector<1x64x32xbf16> to vector<64x32xbf16>
    %179 = arith.truncf %176 : vector<8x64xf32> to vector<8x64xbf16>
    %cst_68 = arith.constant dense<0.000000e+00> : vector<8x32xf32>
    %180 = tpu.matmul %179, %178, %cst_68 {dimension_numbers = #tpu.dot_dimension_numbers<[1], [0], [0], [1], [0, 0, 1, 1], [], []>} : vector<8x64xbf16>, vector<64x32xbf16>, vector<8x32xf32> -> vector<8x32xf32>
    %c0_69 = arith.constant 0 : index
    %c0_70 = arith.constant 0 : index
    %c0_71 = arith.constant 0 : index
    %181 = vector.load %arg17[%c0_69, %c0_70, %c0_71] : memref<1x1x32xf32, #tpu.memory_space<vmem>>, vector<1x1x32xf32>
    %182 = vector.shape_cast %181 : vector<1x1x32xf32> to vector<1x32xf32>
    %183 = vector.broadcast %182 : vector<1x32xf32> to vector<8x32xf32>
    %184 = arith.addf %180, %183 : vector<8x32xf32>
    %185 = arith.addf %184, %155 : vector<8x32xf32>
    %c0_72 = arith.constant 0 : index
    %c0_73 = arith.constant 0 : index
    %c0_74 = arith.constant 0 : index
    %186 = vector.load %arg18[%c0_72, %c0_73, %c0_74] : memref<1x1x32xf32, #tpu.memory_space<vmem>>, vector<1x1x32xf32>
    %187 = vector.shape_cast %186 : vector<1x1x32xf32> to vector<1x32xf32>
    %c0_75 = arith.constant 0 : index
    %c0_76 = arith.constant 0 : index
    %c0_77 = arith.constant 0 : index
    %188 = vector.load %arg19[%c0_75, %c0_76, %c0_77] : memref<1x1x32xf32, #tpu.memory_space<vmem>>, vector<1x1x32xf32>
    %189 = vector.shape_cast %188 : vector<1x1x32xf32> to vector<1x32xf32>
    %cst_78 = arith.constant dense<0.000000e+00> : vector<8xf32>
    %190 = vector.multi_reduction <add>, %185, %cst_78 [1] : vector<8x32xf32> to vector<8xf32>
    %191 = vector.shape_cast %190 : vector<8xf32> to vector<8x1xf32>
    %cst_79 = arith.constant 3.200000e+01 : f32
    %192 = vector.broadcast %cst_79 : f32 to vector<8x1xf32>
    %193 = arith.divf %191, %192 : vector<8x1xf32>
    %194 = vector.broadcast %193 : vector<8x1xf32> to vector<8x32xf32>
    %195 = arith.subf %185, %194 : vector<8x32xf32>
    %196 = arith.mulf %195, %195 : vector<8x32xf32>
    %cst_80 = arith.constant dense<0.000000e+00> : vector<8xf32>
    %197 = vector.multi_reduction <add>, %196, %cst_80 [1] : vector<8x32xf32> to vector<8xf32>
    %198 = vector.shape_cast %197 : vector<8xf32> to vector<8x1xf32>
    %cst_81 = arith.constant 3.200000e+01 : f32
    %199 = vector.broadcast %cst_81 : f32 to vector<8x1xf32>
    %200 = arith.divf %198, %199 : vector<8x1xf32>
    %201 = vector.broadcast %193 : vector<8x1xf32> to vector<8x32xf32>
    %202 = arith.subf %185, %201 : vector<8x32xf32>
    %cst_82 = arith.constant 9.99999996E-13 : f32
    %203 = vector.broadcast %cst_82 : f32 to vector<8x1xf32>
    %204 = arith.addf %200, %203 : vector<8x1xf32>
    %205 = math.rsqrt %204 : vector<8x1xf32>
    %206 = vector.broadcast %205 : vector<8x1xf32> to vector<8x32xf32>
    %207 = arith.mulf %202, %206 : vector<8x32xf32>
    %208 = vector.broadcast %187 : vector<1x32xf32> to vector<8x32xf32>
    %209 = arith.mulf %207, %208 : vector<8x32xf32>
    %210 = vector.broadcast %189 : vector<1x32xf32> to vector<8x32xf32>
    %211 = arith.addf %209, %210 : vector<8x32xf32>
    %c0_83 = arith.constant 0 : index
    %c0_84 = arith.constant 0 : index
    %212 = vector.load %arg25[%c0_83, %c0_84] : memref<8x32xf32, #tpu.memory_space<vmem>>, vector<8x32xf32>
    tpu.vector_store %arg25[%c0_83, %c0_84], %211 {strides = array<i32>} : memref<8x32xf32, #tpu.memory_space<vmem>>, vector<8x32xf32>,
    %c1_i32 = arith.constant 1 : i32
    %213 = arith.cmpi eq, %arg1, %c1_i32 : i32
    %214 = arith.extui %213 : i1 to i32
    %c0_i32_85 = arith.constant 0 : i32
    %215 = arith.cmpi ne, %214, %c0_i32_85 : i32
    scf.if %215 {
      %216 = vector.extract_strided_slice %211 {offsets = [0, 0], sizes = [1, 32], strides = [1, 1]} : vector<8x32xf32> to vector<1x32xf32>
      %c0_86 = arith.constant 0 : index
      %c0_87 = arith.constant 0 : index
      %217 = vector.load %arg20[%c0_86, %c0_87] : memref<32x32xbf16, #tpu.memory_space<vmem>>, vector<32x32xbf16>
      %218 = arith.truncf %216 : vector<1x32xf32> to vector<1x32xbf16>
      %cst_88 = arith.constant dense<0.000000e+00> : vector<1x32xf32>
      %219 = tpu.matmul %218, %217, %cst_88 {dimension_numbers = #tpu.dot_dimension_numbers<[1], [0], [0], [1], [0, 0, 1, 1], [], []>} : vector<1x32xbf16>, vector<32x32xbf16>, vector<1x32xf32> -> vector<1x32xf32>
      %c0_89 = arith.constant 0 : index
      %c0_90 = arith.constant 0 : index
      %220 = vector.load %arg21[%c0_89, %c0_90] : memref<1x32xf32, #tpu.memory_space<vmem>>, vector<1x32xf32>
      %221 = arith.addf %219, %220 : vector<1x32xf32>
      %222 = math.tanh %221 : vector<1x32xf32>
      %c0_91 = arith.constant 0 : index
      %c0_92 = arith.constant 0 : index
      %223 = vector.load %arg22[%c0_91, %c0_92] : memref<32x128xbf16, #tpu.memory_space<vmem>>, vector<32x128xbf16>
      %224 = arith.truncf %222 : vector<1x32xf32> to vector<1x32xbf16>
      %cst_93 = arith.constant dense<0.000000e+00> : vector<1x128xf32>
      %225 = tpu.matmul %224, %223, %cst_93 {dimension_numbers = #tpu.dot_dimension_numbers<[1], [0], [0], [1], [0, 0, 1, 1], [], []>} : vector<1x32xbf16>, vector<32x128xbf16>, vector<1x128xf32> -> vector<1x128xf32>
      %c0_94 = arith.constant 0 : index
      %c0_95 = arith.constant 0 : index
      %226 = vector.load %arg23[%c0_94, %c0_95] : memref<1x128xf32, #tpu.memory_space<vmem>>, vector<1x128xf32>
      %227 = arith.addf %225, %226 : vector<1x128xf32>
      %c0_96 = arith.constant 0 : index
      %c0_97 = arith.constant 0 : index
      %c0_98 = arith.constant 0 : index
      %228 = vector.load %arg24[%c0_96, %c0_97, %c0_98] : memref<1x1x128xf32, #tpu.memory_space<vmem>>, vector<1x1x128xf32>
      %229 = vector.shape_cast %228 : vector<1x1x128xf32> to vector<1x128xf32>
      %230 = vector.shape_cast %227 : vector<1x128xf32> to vector<1x1x128xf32>
      tpu.vector_store %arg24[%c0_96, %c0_97, %c0_98], %230 {strides = array<i32>} : memref<1x1x128xf32, #tpu.memory_space<vmem>>, vector<1x1x128xf32>,
    } else {
    }
    return
  }
  func.func @transform_0(%arg0: i32, %arg1: i32, %arg2: memref<2xi32, #tpu.memory_space<smem>>) -> (i32, i32, i32) {
    %c0_i32 = arith.constant 0 : i32
    %c0_i32_0 = arith.constant 0 : i32
    %c0_i32_1 = arith.constant 0 : i32
    return %arg0, %c0_i32, %c0_i32_0 : i32, i32, i32
  }
  func.func @transform_1(%arg0: i32, %arg1: i32, %arg2: memref<2xi32, #tpu.memory_space<smem>>) -> (i32, i32, i32) {
    %c0_i32 = arith.constant 0 : i32
    %c0_i32_0 = arith.constant 0 : i32
    %c0_i32_1 = arith.constant 0 : i32
    return %arg0, %c0_i32, %c0_i32_0 : i32, i32, i32
  }
  func.func @transform_2(%arg0: i32, %arg1: i32, %arg2: memref<2xi32, #tpu.memory_space<smem>>) -> (i32, i32) {
    %c0_i32 = arith.constant 0 : i32
    %c0_i32_0 = arith.constant 0 : i32
    %c0_i32_1 = arith.constant 0 : i32
    return %c0_i32, %c0_i32_0 : i32, i32
  }
  func.func @transform_3(%arg0: i32, %arg1: i32, %arg2: memref<2xi32, #tpu.memory_space<smem>>) -> (i32, i32) {
    %c0_i32 = arith.constant 0 : i32
    %c0_i32_0 = arith.constant 0 : i32
    %c0_i32_1 = arith.constant 0 : i32
    return %c0_i32, %c0_i32_0 : i32, i32
  }
  func.func @transform_4(%arg0: i32, %arg1: i32, %arg2: memref<2xi32, #tpu.memory_space<smem>>) -> (i32, i32) {
    %c0_i32 = arith.constant 0 : i32
    %c0_i32_0 = arith.constant 0 : i32
    %c0_i32_1 = arith.constant 0 : i32
    return %c0_i32, %c0_i32_0 : i32, i32
  }
  func.func @transform_5(%arg0: i32, %arg1: i32, %arg2: memref<2xi32, #tpu.memory_space<smem>>) -> (i32, i32, i32) {
    %c0_i32 = arith.constant 0 : i32
    %c0_i32_0 = arith.constant 0 : i32
    %c0_i32_1 = arith.constant 0 : i32
    return %arg1, %c0_i32, %c0_i32_0 : i32, i32, i32
  }
  func.func @transform_6(%arg0: i32, %arg1: i32, %arg2: memref<2xi32, #tpu.memory_space<smem>>) -> (i32, i32, i32) {
    %c0_i32 = arith.constant 0 : i32
    %c0_i32_0 = arith.constant 0 : i32
    %c0_i32_1 = arith.constant 0 : i32
    return %arg1, %c0_i32, %c0_i32_0 : i32, i32, i32
  }
  func.func @transform_7(%arg0: i32, %arg1: i32, %arg2: memref<2xi32, #tpu.memory_space<smem>>) -> (i32, i32, i32) {
    %c0_i32 = arith.constant 0 : i32
    %c0_i32_0 = arith.constant 0 : i32
    %c0_i32_1 = arith.constant 0 : i32
    return %arg1, %c0_i32, %c0_i32_0 : i32, i32, i32
  }
  func.func @transform_8(%arg0: i32, %arg1: i32, %arg2: memref<2xi32, #tpu.memory_space<smem>>) -> (i32, i32, i32) {
    %c0_i32 = arith.constant 0 : i32
    %c0_i32_0 = arith.constant 0 : i32
    %c0_i32_1 = arith.constant 0 : i32
    return %arg1, %c0_i32, %c0_i32_0 : i32, i32, i32
  }
  func.func @transform_9(%arg0: i32, %arg1: i32, %arg2: memref<2xi32, #tpu.memory_space<smem>>) -> (i32, i32, i32) {
    %c0_i32 = arith.constant 0 : i32
    %c0_i32_0 = arith.constant 0 : i32
    %c0_i32_1 = arith.constant 0 : i32
    return %arg1, %c0_i32, %c0_i32_0 : i32, i32, i32
  }
  func.func @transform_10(%arg0: i32, %arg1: i32, %arg2: memref<2xi32, #tpu.memory_space<smem>>) -> (i32, i32, i32) {
    %c0_i32 = arith.constant 0 : i32
    %c0_i32_0 = arith.constant 0 : i32
    %c0_i32_1 = arith.constant 0 : i32
    return %arg1, %c0_i32, %c0_i32_0 : i32, i32, i32
  }
  func.func @transform_11(%arg0: i32, %arg1: i32, %arg2: memref<2xi32, #tpu.memory_space<smem>>) -> (i32, i32, i32) {
    %c0_i32 = arith.constant 0 : i32
    %c0_i32_0 = arith.constant 0 : i32
    %c0_i32_1 = arith.constant 0 : i32
    return %arg1, %c0_i32, %c0_i32_0 : i32, i32, i32
  }
  func.func @transform_12(%arg0: i32, %arg1: i32, %arg2: memref<2xi32, #tpu.memory_space<smem>>) -> (i32, i32, i32) {
    %c0_i32 = arith.constant 0 : i32
    %c0_i32_0 = arith.constant 0 : i32
    %c0_i32_1 = arith.constant 0 : i32
    return %arg1, %c0_i32, %c0_i32_0 : i32, i32, i32
  }
  func.func @transform_13(%arg0: i32, %arg1: i32, %arg2: memref<2xi32, #tpu.memory_space<smem>>) -> (i32, i32, i32) {
    %c0_i32 = arith.constant 0 : i32
    %c0_i32_0 = arith.constant 0 : i32
    %c0_i32_1 = arith.constant 0 : i32
    return %arg1, %c0_i32, %c0_i32_0 : i32, i32, i32
  }
  func.func @transform_14(%arg0: i32, %arg1: i32, %arg2: memref<2xi32, #tpu.memory_space<smem>>) -> (i32, i32, i32) {
    %c0_i32 = arith.constant 0 : i32
    %c0_i32_0 = arith.constant 0 : i32
    %c0_i32_1 = arith.constant 0 : i32
    return %arg1, %c0_i32, %c0_i32_0 : i32, i32, i32
  }
  func.func @transform_15(%arg0: i32, %arg1: i32, %arg2: memref<2xi32, #tpu.memory_space<smem>>) -> (i32, i32, i32) {
    %c0_i32 = arith.constant 0 : i32
    %c0_i32_0 = arith.constant 0 : i32
    %c0_i32_1 = arith.constant 0 : i32
    return %arg1, %c0_i32, %c0_i32_0 : i32, i32, i32
  }
  func.func @transform_16(%arg0: i32, %arg1: i32, %arg2: memref<2xi32, #tpu.memory_space<smem>>) -> (i32, i32, i32) {
    %c0_i32 = arith.constant 0 : i32
    %c0_i32_0 = arith.constant 0 : i32
    %c0_i32_1 = arith.constant 0 : i32
    return %arg1, %c0_i32, %c0_i32_0 : i32, i32, i32
  }
  func.func @transform_17(%arg0: i32, %arg1: i32, %arg2: memref<2xi32, #tpu.memory_space<smem>>) -> (i32, i32) {
    %c0_i32 = arith.constant 0 : i32
    %c0_i32_0 = arith.constant 0 : i32
    %c0_i32_1 = arith.constant 0 : i32
    return %c0_i32, %c0_i32_0 : i32, i32
  }
  func.func @transform_18(%arg0: i32, %arg1: i32, %arg2: memref<2xi32, #tpu.memory_space<smem>>) -> (i32, i32) {
    %c0_i32 = arith.constant 0 : i32
    %c0_i32_0 = arith.constant 0 : i32
    %c0_i32_1 = arith.constant 0 : i32
    return %c0_i32, %c0_i32_0 : i32, i32
  }
  func.func @transform_19(%arg0: i32, %arg1: i32, %arg2: memref<2xi32, #tpu.memory_space<smem>>) -> (i32, i32) {
    %c0_i32 = arith.constant 0 : i32
    %c0_i32_0 = arith.constant 0 : i32
    %c0_i32_1 = arith.constant 0 : i32
    return %c0_i32, %c0_i32_0 : i32, i32
  }
  func.func @transform_20(%arg0: i32, %arg1: i32, %arg2: memref<2xi32, #tpu.memory_space<smem>>) -> (i32, i32) {
    %c0_i32 = arith.constant 0 : i32
    %c0_i32_0 = arith.constant 0 : i32
    %c0_i32_1 = arith.constant 0 : i32
    return %c0_i32, %c0_i32_0 : i32, i32
  }
  func.func @transform_21(%arg0: i32, %arg1: i32, %arg2: memref<2xi32, #tpu.memory_space<smem>>) -> (i32, i32, i32) {
    %c0_i32 = arith.constant 0 : i32
    %c0_i32_0 = arith.constant 0 : i32
    %c0_i32_1 = arith.constant 0 : i32
    return %arg0, %c0_i32, %c0_i32_0 : i32, i32, i32
  }
}

</mosaic_0001>

<bundles_post_ra>
// kernel: bert_classifier_forward.1
= control target key start
LH: loop header
LB: loop body
LE: loop exit
PB: predicated region body
PF: predicated region fallthrough
CT: control target
= control target key end

     0   :  { %s3183_s0 = inlined_call_operand.vmem [shape: s32[2], index: 0, kind: input, shape index: {}]   ;;  %s3184_s1 = inlined_call_operand.vmem [shape: f32[2,8,32], index: 1, kind: input, shape index: {}]   ;;  %s3185_s2 = inlined_call_operand.vmem [shape: f32[2,8,32], index: 2, kind: input, shape index: {}]   ;;  %s3186_s3 = inlined_call_operand.vmem [shape: f32[8,32], index: 3, kind: input, shape index: {}]   ;;  %s3187_s4 = inlined_call_operand.vmem [shape: f32[1,32], index: 4, kind: input, shape index: {}]   ;;  %s3188_s5 = inlined_call_operand.vmem [shape: f32[1,32], index: 5, kind: input, shape index: {}]   ;;  %s3189_s6 = inlined_call_operand.vmem [shape: bf16[2,32,96], index: 6, kind: input, shape index: {}]   ;;  %s3190_s7 = inlined_call_operand.vmem [shape: f32[2,1,96], index: 7, kind: input, shape index: {}]   ;;  %s3191_s8 = inlined_call_operand.vmem [shape: bf16[2,32,32], index: 8, kind: input, shape index: {}]   ;;  %s3192_s9 = inlined_call_operand.vmem [shape: f32[2,1,32], index: 9, kind: input, shape index: {}]   ;;  %s3193_s10 = inlined_call_operand.vmem [shape: f32[2,1,32], index: 10, kind: input, shape index: {}]   ;;  %s3194_s11 = inlined_call_operand.vmem [shape: f32[2,1,32], index: 11, kind: input, shape index: {}]   ;;  %s3195_s12 = inlined_call_operand.vmem [shape: bf16[2,32,64], index: 12, kind: input, shape index: {}]   ;;  %s3196_s13 = inlined_call_operand.vmem [shape: f32[2,1,64], index: 13, kind: input, shape index: {}]   ;;  %s3197_s14 = inlined_call_operand.vmem [shape: bf16[2,64,32], index: 14, kind: input, shape index: {}]   ;;  %s3198_s15 = inlined_call_operand.vmem [shape: f32[2,1,32], index: 15, kind: input, shape index: {}]   ;;  %s3199_s16 = inlined_call_operand.vmem [shape: f32[2,1,32], index: 16, kind: input, shape index: {}]   ;;  %s3200_s17 = inlined_call_operand.vmem [shape: f32[2,1,32], index: 17, kind: input, shape index: {}]   ;;  %s3201_s18 = inlined_call_operand.vmem [shape: bf16[32,32], index: 18, kind: input, shape index: {}]   ;;  %s3202_s19 = inlined_call_operand.vmem [shape: f32[1,32], index: 19, kind: input, shape index: {}]   ;;  %s3203_s20 = inlined_call_operand.vmem [shape: bf16[32,128], index: 20, kind: input, shape index: {}]   ;;  %s3204_s21 = inlined_call_operand.vmem [shape: f32[1,128], index: 21, kind: input, shape index: {}]   ;;  %s3205_s22 = inlined_call_operand.hbm [shape: f32[2,1,128], index: 22, kind: output, shape index: {}]  }
   0x1   :  { %3222 = sst [smem:[#allocation22_spill]] %s3183_s0 }
   0x2   :  { %3223 = sst [smem:[#allocation23_spill]] %s3184_s1 }
   0x3   :  { %3224 = sst [smem:[#allocation24_spill]] %s3185_s2 }
   0x4   :  { %3225 = sst [smem:[#allocation25_spill]] %s3186_s3 }
   0x5   :  { %3226 = sst [smem:[#allocation26_spill]] %s3187_s4 }
   0x6   :  { %3227 = sst [smem:[#allocation27_spill]] %s3188_s5 }
   0x7   :  { %3228 = sst [smem:[#allocation28_spill]] %s3189_s6 }
   0x8   :  { %3229 = sst [smem:[#allocation29_spill]] %s3191_s8 }
   0x9   :  { %3230 = sst [smem:[#allocation30_spill]] %s3195_s12 }
   0xa   :  { %3231 = sst [smem:[#allocation31_spill]] %s3199_s16 }
   0xb   :  { %3232 = sst [smem:[#allocation32_spill]] %s3201_s18 }
   0xc   :  { %3233 = sst [smem:[#allocation33_spill]] %s3202_s19 }
   0xd   :  { %3234 = sst [smem:[#allocation34_spill]] %s3203_s20 }
   0xe   :  { %3235 = sst [smem:[#allocation35_spill]] %s3204_s21 }
   0xf   :  { %3236 = sst [smem:[#allocation36_spill]] %s3205_s22 }
  0x10   :  { %s3237_s29 = sld [smem:[#allocation22_spill]] }
  0x16   :  { %s27_s16 = sshll.u32 %s3237_s29, 4  ;;  %s28_s16 = int_to_ptr.vmem [resolvable:$true] %s27_s16 }
  0x17   :  { %s2547_s30 = scalar_lea.vmem %s28_s16, 16  ;;  %p2552_p1 = scmp.lt.s32.totalorder %s28_s16, %s28_s16 }
  0x18   :  { %p2548_p0 = scmp.ne.s32.totalorder %s28_s16, %s2547_s30  ;;  %p2553_p2 = scmp.lt.s32.totalorder %s2547_s30, %s2547_s30 }
  0x1a   :  { %p2554_p3 = por %p2553_p2, %p2552_p1 }
  0x1c   :  { %p2555_p4 = pnand %p2554_p3, %p2548_p0 }
  0x1e   :  { %2558 = shalt.err (!%p2555_p4)  }
  0x1f   :  { %s2655_s4 = smov [#allocation4]  }
  0x20   :  { %30 = dma.vmem_to_smem %s28_s16, 16, %s2655_s4, [#allocation3] }
  0x21   :  { %2617 = dma.done.wait [#allocation3], 16 }
  0x22   :  { %2618 = vsyncadd [#allocation3], 4294967280 }
  0x23   :  { %32 = sfence }
  0x24   :  { %33 = vsyncpa [#allocation6], 0 }
  0x25   :  { %35 = vsyncpa [#allocation6 + $0x1], 0  ;;  %s2791_s0 = smov 0   ;;  %s2793_s23 = smov 0  }
  0x26   :  { %s2795_s1 = smov 0   ;;  %s2797_s5 = smov 0  }
  0x27   :  { %s2799_s24 = smov 0   ;;  %s2801_s6 = smov 0  }
  0x28   :  { %s2803_s25 = smov 0   ;;  %s2805_s16 = smov 0  }
  0x29 LB: > { %3238 = sst [smem:[#allocation9_spill]] %s2625_s0  ;;  %s2201_s26 = sadd.s32 4294967295, %s2653_s16   ;;  %s2653_s16 = sphi %s2805_s16, %s41_s16   ;;  %s2649_s25 = sphi %s2803_s25, %s3289_s25   ;;  %s2645_s6 = sphi %s2801_s6, %s3292_s6   ;;  %s2641_s24 = sphi %s2799_s24, %s3287_s24   ;;  %s2637_s5 = sphi %s2797_s5, %s3286_s5   ;;  %s2633_s1 = sphi %s2795_s1, %s3285_s1   ;;  %s2629_s23 = sphi %s2793_s23, %s3291_s23   ;;  %s2625_s0 = sphi %s2791_s0, %s3290_s0  }
  0x2a   : > { %3239 = sst [smem:[#allocation10_spill]] %s2633_s1  ;;  %s2202_s2 = sadd.s32 4294967294, %s2653_s16  }
  0x2b   : > { %3240 = sst [smem:[#allocation11_spill]] %s2637_s5  ;;  %s50_s27 = sadd.s32 1, %s2645_s6 }
  0x2c   : > { %3241 = sst [smem:[#allocation12_spill]] %s2641_s24  ;;  %p51_p5 = scmp.ge.s32.totalorder %s50_s27, 2 }
  0x2d   : > { %3242 = sst [smem:[#allocation13_spill]] %s2645_s6  ;;  %s53_s3 = sadd.s32 1, %s2649_s25 }
  0x2e   : > { %3243 = sst [smem:[#allocation14_spill]] %s2649_s25  ;;  %p581_p6 = scmp.ne.s32.totalorder %s2633_s1, %s2629_s23 }
  0x2f   : > { %3244 = sst [smem:[#allocation15_spill]] %s2653_s16  ;;  %p582_p7 = scmp.eq.s32.totalorder %s2201_s26, 3 }
  0x30   : > { %s3294_s27 = smov (%p51_p5, %s50_s27), 0  ;;  %s3296_s3 = smov (!%p51_p5, %s53_s3), %s2649_s25 }
  0x31   : > { %3245 = sst [smem:[#allocation16_spill]] %s3294_s27  ;;  %p2840_p8 = por %p582_p7, %p581_p6 }
  0x32   : > { %p587_p9 = scmp.ne.s32.totalorder %s2629_s23, %s2625_s0  ;;  %p55_p10 = scmp.ge.s32.totalorder %s3296_s3, 2 }
  0x33   : > { %s3246_s28 = scalar_select %p2840_p8, 1, 0 }
  0x34   : > { %p588_p11 = scmp.eq.s32.totalorder %s2202_s2, 3  ;;  %p2205_p12 = scmp.ge.s32.totalorder %s2653_s16, 1 }
  0x35   : > { %3247 = sst [smem:[#allocation17_spill]] %s3246_s28  ;;  %p721_p13 = scmp.lt.s32.totalorder %s2653_s16, 5 }
  0x36   : > { %s3298_s3 = smov (%p55_p10, %s3296_s3), 0  ;;  %p2850_p0 = por %p588_p11, %p587_p9 }
  0x37   : > { %3248 = sst [smem:[#allocation18_spill]] %s3298_s3  ;;  %p722_p1 = pnand %p2205_p12, %p721_p13 }
  0x38   : > { %s3249_s29 = scalar_select %p2850_p0, 1, 0 }
  0x39   : > { %s568_s30 = ssub.s32 %s2649_s25, %s3298_s3  ;;  %s571_s4 = sadd.s32 1, %s2633_s1 }
  0x3a   : > { %3250 = sst [smem:[#allocation19_spill]] %s3249_s29  ;;  %p569_p2 = scmp.eq.s32.totalorder %s568_s30, 0 }
  0x3b   : > { %725 = sbr.rel (%p722_p1) target bundleno = 4361 (0x1109), region = 104 }
  0x3c   : > { %s2858_s26 = scalar_select %p569_p2, %s2633_s1, %s571_s4  }
  0x3e   : > { %3251 = sst [smem:[#allocation20_spill]] %s2858_s26 }
  0x40   : > { %p827_p3 = scmp.lt.s32.totalorder %s2641_s24, 1  ;;  %p835_p4 = scmp.lt.s32.totalorder %s2637_s5, 1 }
  0x41   : > { %s3252_s25 = sld [smem:[#allocation23_spill]] }
  0x42   : > { %s828_s27 = scalar_select %p827_p3, %s2641_s24, 1 }
  0x43   : > { %s2865_s6 = scalar_select %p835_p4, %s2637_s5, 1 }
  0x44   : > { %s2206_s30 = sshll.u32 %s828_s27, 3  ;;  %s3253_s29 = sld [smem:[#allocation24_spill]] }
  0x45   : > { %s2260_s16 = sshll.u32 %s2865_s6, 4  ;;  %s3254_s18 = sld [smem:[#allocation28_spill]] }
  0x46   : > { %s3255_s8 = sld [smem:[#allocation29_spill]]  ;;  %s872_s22 = scalar_lea.vmem %s3198_s15, %s2865_s6 }
  0x47   : > { %s830_s2 = scalar_lea.vmem %s3252_s25, %s2206_s30  ;;  %s3257_s12 = sld [smem:[#allocation30_spill]] }
  0x48   : > { %s3259_s5 = sand.u32 1, %s2629_s23  }
  0x49   : > { %s2929_s27 = scalar_lea.vmem [#allocation5], %s3259_s5 }
  0x4a   : > { %s834_s0 = scalar_lea.vmem %s3253_s29, %s2206_s30  ;;  %s3258_s30 = sld [smem:[#allocation31_spill]] }
  0x4b   : > { %s2881_s24 = scalar_lea.vmem %s3254_s18, %s2260_s16 }
  0x4c   : > { %s2886_s3 = scalar_lea.vmem %s3255_s8, %s2260_s16  ;;  %s3260_s8 = sld [smem:[#allocation11_spill]] }
  0x4d   : > { %3256 = sst [smem:[#allocation21_spill]] %s2886_s3  ;;  %s2903_s20 = scalar_lea.vmem %s3257_s12, %s2260_s16 }
  0x4e   : > { %s2263_s3 = sshll.u32 %s2865_s6, 5  ;;  %s878_s12 = scalar_lea.vmem %s3200_s17, %s2865_s6 }
  0x4f   : > { %s2913_s1 = scalar_lea.vmem %s3197_s14, %s2263_s3 }
  0x50   : > { %s875_s19 = scalar_lea.vmem %s3258_s30, %s2865_s6 }
  0x52   : > { %p2216_p5 = scmp.ne.s32.totalorder %s3260_s8, 0 }
  0x53   : > { %s3261_s4 = sld [smem:[#allocation25_spill]] (!%p2216_p5) }
  0x54   : > { %883 = sbr.rel (%p2216_p5) target bundleno = 404 (0x194), region = 108  ;;  %s3263_s29 = sld [smem:[#allocation27_spill]] (!%p2216_p5) }
  0x59   : > { %v884_v0 = vld [vmem:[%s830_s2] sm:$0xff]  ;;  %vm891_vm0 = vcmask 261120  }
  0x5a   : > { %v885_v1 = vld [vmem:[%s834_s0] sm:$0xff]  ;;  %s3262_s0 = sld [smem:[#allocation26_spill]] }
  0x5b   : > { %v887_v2 = vld [vmem:[%s3261_s4] sm:$0xff]  ;;  %v886_v3 = vadd.f32 %v885_v1, %v884_v0 }
  0x5c   : > { %v2218_v17 = vld [vmem:[%s3263_s29] ss:$0 sm:$0xff] }
  0x5d   : > { %v888_v4 = vadd.f32 %v887_v2, %v886_v3 }
  0x5f   : > { %v892_v5 = vsel %vm891_vm0, %v888_v4, 0.0 }
  0x60   : > { %893 = vadd.xlane.f32.xlu0 %v892_v5  ;;  %v2217_v15 = vld [vmem:[%s3262_s0] ss:$0 sm:$0xff] }
  0xe9   : > { %v894_v6 = vpop.xlane.xlu0 %893 }
  0xea   : > { %v896_v7 = vmul.f32 0.03125, %v894_v6 }
  0xec   : > { %v897_v8 = vsub.f32 %v888_v4, %v896_v7 }
  0xee   : > { %v898_v9 = vmul.f32 %v897_v8, %v897_v8 }
  0xf0   : > { %v899_v10 = vsel %vm891_vm0, %v898_v9, 0.0 }
  0xf1   : > { %900 = vadd.xlane.f32.xlu0 %v899_v10 }
 0x17a   : > { %v901_v11 = vpop.xlane.xlu0 %900 }
 0x17b   : > { %v902_v12 = vmul.f32 0.03125, %v901_v11 }
 0x17d   : > { %v903_v13 = vadd.f32 1e-12, %v902_v12 }
 0x17f   : > { %2509 = vrsqrt.f32 %v903_v13 }
 0x18c   : > { %v2510_v14 = vpop.eup %2509 }
 0x18d   : > { %v905_v16 = vmul.f32 %v2510_v14, %v897_v8 }
 0x18f   : > { %v912_v18 = vmul.f32 %v2217_v15, %v905_v16 }
 0x191   : > { %v919_v19 = vadd.f32 %v2218_v17, %v912_v18 }
 0x193   : > { %920 = vst.msk [vmem:[#allocation2] sm:$0xff] %vm891_vm0, %v919_v19 }
 0x194 PF: > { %v2511_v20 = vld [vmem:[%s2881_s24 + $0x8] sm:$0xff]   ;;  %v2656_v21 = vmov 0.0   ;;  %v2512_v22 = vld [vmem:[%s2881_s24] sm:$0xff]   ;;  %vm2657_vm1 = vmmov 0   ;;  %vm952_vm2 = vcmask 261120   ;;  %s3264_s28 = scalar_lea.vmem %s3190_s7, %s2865_s6  ;;  %s2658_s16 = smov 120   ;;  %v923_v37 = vlaneseq }
 0x195   : > { %2305 = vmatprep.subr.bf16.mxu1 %v2656_v21  ;;  %2319 = vmatprep.subr.bf16.mxu0 %v2656_v21  ;;  %v2219_v25 = vld [vmem:[%s3264_s28] ss:$0 sm:$0xff]  ;;  %s2659_s18 = smov 96   ;;  %s2660_s5 = smov 88   ;;  %vm1000_vm3 = vcmask 64512   ;;  %v2661_v40 = vmov -10000.0  }
 0x196   : > { %2306 = vmatpush3.bf16.msra.mxu1 %v2511_v20  ;;  %2309 = vmatprep.mubr.msk.bf16.mxu1 %vm2657_vm1, %v2656_v21  ;;  %s3265_s3 = sld [smem:[#allocation12_spill]]  ;;  %v924_v38 = vand.u32 127, %v923_v37  ;;  %s2662_s4 = smov 64   ;;  %vm1064_vm5 = vcmask 1043456   ;;  %vm1787_vm6 = vcmask 523264  }
 0x197   : > { %2307 = vmatprep.subr.bf16.mxu1 %v2656_v21  ;;  %2321 = vmatprep.mubr.msk.bf16.mxu0 %vm2657_vm1, %v2656_v21  ;;  %s2663_s8 = smov 56   ;;  %s2664_s21 = smov 112  }
 0x198   : > { %s2665_s0 = smov 80   ;;  %s3266_s2 = sld [smem:[#allocation21_spill]] }
 0x199   : > { %s2666_s30 = smov 72   ;;  %s2667_s29 = smov 104  }
 0x19a   : > { %v2950_v23 = vld [vmem:[#allocation2] sm:$0xff]  ;;  %2308 = vmatpush3.bf16.msra.mxu1 %v2512_v22  ;;  %s2668_s24 = smov 48   ;;  %s2669_s26 = smov 40  }
 0x19b   : > { %v932_v24 = vpack.c.bf16 %v2950_v23, %v2950_v23  ;;  %2313 = vmatprep.subr.bf16.mxu1 %v2656_v21 }
 0x19c   : > { %s922_s25 = sld [smem:[#allocation4 + %s3265_s3]] }
 0x19d   : > { %2310 = vmatmul.mubr.msk.bf16.vlgmr.msra.gmra.mxu1 %vm952_vm2, %v932_v24 }
 0x19e   : > { %2315 = vmatprep.mubr.msk.bf16.mxu1 %vm2657_vm1, %v2656_v21  ;;  %v1108_v12 = vld [vmem:[%s3266_s2] sm:$0xf]  ;;  %v1220_v14 = vld [vmem:[%s3266_s2 + $0x4] sm:$0xf] }
 0x19f   : > { %v1272_v13 = vsel %vm1064_vm5, %v1108_v12, 0  ;;  %v1226_v15 = vsel %vm1064_vm5, %v1220_v14, 0 }
 0x1a2   : > { %v925_v39 = vstv %s922_s25  ;;  %s3268_s25 = scalar_lea.vmem %s3193_s10, %s2865_s6 }
 0x1a3   : > { %vm926_vm4 = vcmp.lt.s32.totalorder %v924_v38, %v925_v39 }
 0x1a4   : > { %v2983_v41 = vsel %vm926_vm4, 0.0, %v2661_v40 }
 0x25d   : > { %v990_v26 = vpop.f32.mrf.mxu1 }
 0x25e   : > { %v991_v27 = vadd.f32 %v2219_v25, %v990_v26 }
 0x25f   : > { %v2311_v28 = vpop.f32.mrf.mxu1 }
 0x260   : > { %v2966_v29 = vpack.c.bf16 %v991_v27, %v991_v27 }
 0x261   : > { %v993_v30 = vpop.f32.mrf.mxu1 }
 0x262   : > { %1110 = vrot.lane.b32.xlu1 %v2966_v29, %s2658_s16  ;;  %998 = vrot.lane.b32.xlu0 %v2966_v29, %s2659_s18  ;;  %s3267_s18 = scalar_lea.vmem %s3192_s9, %s2865_s6  ;;  %s3272_s16 = sld [smem:[#allocation11_spill]] }
 0x263   : > { %v2312_v31 = vpop.f32.mrf.mxu1 }
 0x266   : > { %1112 = vrot.lane.b32.xlu0 %v2966_v29, %s2660_s5 }
 0x268   : > { %p2250_p6 = scmp.ne.s32.totalorder %s3272_s16, 1 }
 0x269   : > { %s3273_s3 = sld [smem:[#allocation32_spill]] (!%p2250_p6) }
 0x2d4   : > { %v999_v32 = vpop.permute.xlu0 %998  ;;  %v1111_v36 = vpop.permute.xlu1 %1110 }
 0x2d5   : > { %v1005_v33 = vsel %vm1000_vm3, %v999_v32, 0 }
 0x2d6   : > { %2314 = vmatpush3.bf16.xpose.msra.mxu1 %v1005_v33 }
 0x2d7   : > { %2325 = vmatprep.subr.bf16.mxu1 %v2656_v21 }
 0x2d8   : > { %v1113_v34 = vpop.permute.xlu0 %1112 }
 0x2d9   : > { %v1118_v35 = vsel %vm1000_vm3, %v1113_v34, 0 }
 0x2dd   : > { %2316 = vmatmul.mubr.msk.bf16.vlgmr.msra.gmra.mxu1 %vm1000_vm3, %v2966_v29 }
 0x2de   : > { %2326 = vmatpush3.bf16.xpose.msra.mxu1 %v1118_v35  ;;  %2327 = vmatprep.mubr.msk.bf16.mxu1 %vm2657_vm1, %v2656_v21 }
 0x2df   : > { %2337 = vmatprep.subr.bf16.mxu1 %v2656_v21 }
 0x2e5   : > { %2328 = vmatmul.mubr.msk.bf16.vlgmr.msra.gmra.mxu1 %vm1000_vm3, %v1111_v36 }
 0x2e6   : > { %2339 = vmatprep.mubr.msk.bf16.mxu1 %vm2657_vm1, %v2656_v21  ;;  %2338 = vmatpush3.bf16.msra.mxu1 %v1226_v15 }
 0x2e7   : > { %2349 = vmatprep.subr.bf16.mxu1 %v2656_v21 }
 0x39d   : > { %v1041_v42 = vpop.f32.mrf.mxu1 }
 0x39e   : > { %v1042_v43 = vadd.f32 %v1041_v42, %v2983_v41 }
 0x39f   : > { %v2317_v44 = vpop.f32.mrf.mxu1 }
 0x3a0   : > { %v1047_v45 = vsel %vm1000_vm3, %v1042_v43, -inf }
 0x3a1   : > { %1048 = vmax.xlane.f32.xlu1 %v1047_v45  ;;  %v1044_v46 = vpop.f32.mrf.mxu1 }
 0x3a3   : > { %v2318_v47 = vpop.f32.mrf.mxu1 }
 0x3a5   : > { %v1154_v48 = vpop.f32.mrf.mxu1 }
 0x3a6   : > { %v1155_v49 = vadd.f32 %v1154_v48, %v2983_v41 }
 0x3a7   : > { %v2329_v50 = vpop.f32.mrf.mxu1 }
 0x3a8   : > { %v1160_v51 = vsel %vm1000_vm3, %v1155_v49, -inf }
 0x3a9   : > { %1161 = vmax.xlane.f32.xlu0 %v1160_v51  ;;  %v1157_v52 = vpop.f32.mrf.mxu1 }
 0x3ab   : > { %v2330_v53 = vpop.f32.mrf.mxu1 }
 0x42a   : > { %v1049_v54 = vpop.xlane.xlu1 %1048 }
 0x42b   : > { %v1050_v55 = vsub.f32 %v1042_v43, %v1049_v54 }
 0x42d   : > { %v1051_v56 = vmul.f32 1.442695, %v1050_v55 }
 0x42f   : > { %2519 = vpow2.f32 %v1051_v56 }
 0x432   : > { %v1162_v57 = vpop.xlane.xlu0 %1161 }
 0x433   : > { %v1163_v58 = vsub.f32 %v1155_v49, %v1162_v57 }
 0x435   : > { %v1164_v59 = vmul.f32 1.442695, %v1163_v58 }
 0x437   : > { %2521 = vpow2.f32 %v1164_v59 }
 0x43c   : > { %v2520_v60 = vpop.eup %2519 }
 0x43d   : > { %v1053_v61 = vsel %vm1000_vm3, %v2520_v60, 0.0 }
 0x43e   : > { %1054 = vadd.xlane.f32.xlu0 %v1053_v61 }
 0x444   : > { %v2522_v62 = vpop.eup %2521 }
 0x445   : > { %v1166_v63 = vsel %vm1000_vm3, %v2522_v62, 0.0 }
 0x446   : > { %1167 = vadd.xlane.f32.xlu1 %v1166_v63 }
 0x454   : > { %1059 = vrot.lane.b32.xlu0 %v2966_v29, %s2662_s4  ;;  %s3274_s4 = sld [smem:[#allocation34_spill]] (!%p2250_p6) }
 0x457   : > { %1172 = vrot.lane.b32.xlu1 %v2966_v29, %s2663_s8 }
 0x458   : > { %1314 = vrot.lane.b32.xlu0 %v2966_v29, %s2664_s21 }
 0x45b   : > { %1316 = vrot.lane.b32.xlu1 %v2966_v29, %s2665_s0 }
 0x4c7   : > { %v1055_v0 = vpop.xlane.xlu0 %1054 }
 0x4c8   : > { %2523 = vrcp.f32 %v1055_v0 }
 0x4cb   : > { %v1060_v1 = vpop.permute.xlu0 %1059 }
 0x4cc   : > { %v1066_v2 = vsel %vm1064_vm5, %v1060_v1, 0 }
 0x4cd   : > { %2320 = vmatpush3.bf16.msra.mxu0 %v1066_v2 }
 0x4ce   : > { %2331 = vmatprep.subr.bf16.mxu0 %v2656_v21 }
 0x4cf   : > { %v1168_v3 = vpop.xlane.xlu1 %1167  ;;  %v1315_v31 = vpop.permute.xlu0 %1314 }
 0x4d0   : > { %2525 = vrcp.f32 %v1168_v3 }
 0x4d3   : > { %v1173_v6 = vpop.permute.xlu1 %1172 }
 0x4d4   : > { %v1178_v8 = vsel %vm1064_vm5, %v1173_v6, 0 }
 0x4d5   : > { %v2524_v4 = vpop.eup %2523 }
 0x4d6   : > { %v1057_v5 = vmul.f32 %v2524_v4, %v2520_v60 }
 0x4d7   : > { %v1317_v22 = vpop.permute.xlu1 %1316 }
 0x4d8   : > { %v1058_v7 = vpack.c.bf16 %v1057_v5, %v1057_v5  ;;  %v1322_v27 = vsel %vm1000_vm3, %v1317_v22, 0 }
 0x4da   : > { %2322 = vmatmul.mubr.msk.bf16.vlgmr.msra.gmra.mxu0 %vm1000_vm3, %v1058_v7 }
 0x4db   : > { %2332 = vmatpush3.bf16.msra.mxu0 %v1178_v8  ;;  %2333 = vmatprep.mubr.msk.bf16.mxu0 %vm2657_vm1, %v2656_v21 }
 0x4dc   : > { %2343 = vmatprep.subr.bf16.mxu0 %v2656_v21 }
 0x4dd   : > { %v2526_v9 = vpop.eup %2525 }
 0x4de   : > { %v1170_v10 = vmul.f32 %v2526_v9, %v2522_v62  ;;  %v1424_v62 = vld [vmem:[%s3266_s2 + $0x8] sm:$0xf] }
 0x4df   : > { %v1430_v63 = vsel %vm1064_vm5, %v1424_v62, 0  ;;  %v2516_v62 = vld [vmem:[%s2913_s1 + $0x10] sm:$0xff]  }
 0x4e0   : > { %v1171_v11 = vpack.c.bf16 %v1170_v10, %v1170_v10 }
 0x4e2   : > { %2334 = vmatmul.mubr.msk.bf16.vlgmr.msra.gmra.mxu0 %vm1000_vm3, %v1171_v11 }
 0x4e3   : > { %2345 = vmatprep.mubr.msk.bf16.mxu0 %vm2657_vm1, %v2656_v21  ;;  %2344 = vmatpush3.bf16.msra.mxu0 %v1272_v13 }
 0x4e4   : > { %2355 = vmatprep.subr.bf16.mxu0 %v2656_v21 }
 0x59a   : > { %v1102_v16 = vpop.f32.mrf.mxu0 }
 0x59b   : > { %v1109_v17 = vpack.c.bf16 %v1102_v16, %v1102_v16 }
 0x59c   : > { %v2323_v18 = vpop.f32.mrf.mxu0 }
 0x59d   : > { %2346 = vmatmul.mubr.msk.bf16.vlgmr.msra.gmra.mxu0 %vm1000_vm3, %v1109_v17 }
 0x59e   : > { %v1105_v19 = vpop.f32.mrf.mxu0  ;;  %2357 = vmatprep.mubr.msk.bf16.mxu0 %vm2657_vm1, %v2656_v21 }
 0x5a0   : > { %v2324_v20 = vpop.f32.mrf.mxu0 }
 0x5a1   : > { %v1583_v20 = vld [vmem:[%s3266_s2 + $0xc] sm:$0xf]  ;;  %s3270_s2 = scalar_lea.vmem %s3196_s13, %s2865_s6 }
 0x5a2   : > { %v1214_v24 = vpop.f32.mrf.mxu0 }
 0x5a3   : > { %v1221_v25 = vpack.c.bf16 %v1214_v24, %v1214_v24 }
 0x5a4   : > { %v2335_v26 = vpop.f32.mrf.mxu0 }
 0x5a5   : > { %2340 = vmatmul.mubr.msk.bf16.vlgmr.msra.gmra.mxu1 %vm1000_vm3, %v1221_v25 }
 0x5a6   : > { %2350 = vmatpush3.bf16.xpose.msra.mxu1 %v1322_v27  ;;  %v1217_v28 = vpop.f32.mrf.mxu0  ;;  %2351 = vmatprep.mubr.msk.bf16.mxu1 %vm2657_vm1, %v2656_v21 }
 0x5a7   : > { %2361 = vmatprep.subr.bf16.mxu1 %v2656_v21 }
 0x5a8   : > { %v2336_v30 = vpop.f32.mrf.mxu0 }
 0x5ad   : > { %2352 = vmatmul.mubr.msk.bf16.vlgmr.msra.gmra.mxu1 %vm1000_vm3, %v1315_v31 }
 0x5ae   : > { %2363 = vmatprep.mubr.msk.bf16.mxu1 %vm2657_vm1, %v2656_v21  ;;  %2362 = vmatpush3.bf16.msra.mxu1 %v1430_v63  ;;  %v2517_v63 = vld [vmem:[%s2913_s1 + $0x8] sm:$0xff]  }
 0x5af   : > { %2373 = vmatprep.subr.bf16.mxu1 %v2656_v21 }
 0x65d   : > { %v1308_v32 = vpop.f32.mrf.mxu0 }
 0x65f   : > { %v2347_v33 = vpop.f32.mrf.mxu0 }
 0x661   : > { %v1311_v34 = vpop.f32.mrf.mxu0 }
 0x663   : > { %v2348_v35 = vpop.f32.mrf.mxu0 }
 0x665   : > { %v1262_v36 = vpop.f32.mrf.mxu1 }
 0x666   : > { %v3022_v37 = vadd.f32 %v1308_v32, %v1262_v36  ;;  %v2235_v36 = vld [vmem:[%s3267_s18] ss:$0 sm:$0xff] }
 0x667   : > { %v2341_v38 = vpop.f32.mrf.mxu1 }
 0x669   : > { %v1265_v39 = vpop.f32.mrf.mxu1 }
 0x66b   : > { %v2342_v40 = vpop.f32.mrf.mxu1 }
 0x66d   : > { %v1358_v42 = vpop.f32.mrf.mxu1 }
 0x66e   : > { %v1359_v43 = vadd.f32 %v1358_v42, %v2983_v41 }
 0x66f   : > { %v2353_v44 = vpop.f32.mrf.mxu1 }
 0x670   : > { %v1364_v45 = vsel %vm1000_vm3, %v1359_v43, -inf }
 0x671   : > { %1365 = vmax.xlane.f32.xlu1 %v1364_v45  ;;  %v1361_v46 = vpop.f32.mrf.mxu1 }
 0x673   : > { %v2354_v47 = vpop.f32.mrf.mxu1 }
 0x682   : > { %1475 = vrot.lane.b32.xlu1 %v2966_v29, %s2666_s30 }
 0x686   : > { %1473 = vrot.lane.b32.xlu1 %v2966_v29, %s2667_s29 }
 0x6fa   : > { %v1366_v48 = vpop.xlane.xlu1 %1365 }
 0x6fb   : > { %v1367_v49 = vsub.f32 %v1359_v43, %v1366_v48 }
 0x6fd   : > { %v1368_v50 = vmul.f32 1.442695, %v1367_v49 }
 0x6fe   : > { %v1476_v58 = vpop.permute.xlu1 %1475 }
 0x6ff   : > { %2527 = vpow2.f32 %v1368_v50  ;;  %v1481_v60 = vsel %vm1000_vm3, %v1476_v58, 0  ;;  %v2513_v50 = vld [vmem:[%s2903_s20 + $0x8] sm:$0xff]  }
 0x702   : > { %v1474_v61 = vpop.permute.xlu1 %1473 }
 0x70c   : > { %v2528_v51 = vpop.eup %2527 }
 0x70d   : > { %v1370_v52 = vsel %vm1000_vm3, %v2528_v51, 0.0 }
 0x70e   : > { %1371 = vadd.xlane.f32.xlu0 %v1370_v52 }
 0x724   : > { %1376 = vrot.lane.b32.xlu0 %v2966_v29, %s2668_s24 }
 0x797   : > { %v1372_v53 = vpop.xlane.xlu0 %1371 }
 0x798   : > { %2529 = vrcp.f32 %v1372_v53 }
 0x79b   : > { %v1377_v54 = vpop.permute.xlu0 %1376 }
 0x79c   : > { %v1382_v55 = vsel %vm1064_vm5, %v1377_v54, 0 }
 0x79d   : > { %2356 = vmatpush3.bf16.msra.mxu0 %v1382_v55  ;;  %v2236_v55 = vld [vmem:[%s3268_s25] ss:$0 sm:$0xff] }
 0x79e   : > { %2367 = vmatprep.subr.bf16.mxu0 %v2656_v21 }
 0x7a5   : > { %v2530_v56 = vpop.eup %2529 }
 0x7a6   : > { %v1374_v57 = vmul.f32 %v2530_v56, %v2528_v51  ;;  %v2514_v51 = vld [vmem:[%s2903_s20] sm:$0xff]   ;;  %s3269_s20 = scalar_lea.vmem %s3194_s11, %s2865_s6 }
 0x7a8   : > { %v1375_v59 = vpack.c.bf16 %v1374_v57, %v1374_v57  ;;  %v2237_v57 = vld [vmem:[%s3269_s20] ss:$0 sm:$0xff] }
 0x7aa   : > { %2358 = vmatmul.mubr.msk.bf16.vlgmr.msra.gmra.mxu0 %vm1000_vm3, %v1375_v59 }
 0x7ab   : > { %2368 = vmatpush3.bf16.xpose.msra.mxu0 %v1481_v60  ;;  %2369 = vmatprep.mubr.msk.bf16.mxu0 %vm2657_vm1, %v2656_v21 }
 0x7ac   : > { %2379 = vmatprep.subr.bf16.mxu0 %v2656_v21 }
 0x7b2   : > { %2370 = vmatmul.mubr.msk.bf16.vlgmr.msra.gmra.mxu0 %vm1000_vm3, %v1474_v61  ;;  %v2515_v61 = vld [vmem:[%s2913_s1 + $0x18] sm:$0xff]  }
 0x7b3   : > { %2381 = vmatprep.mubr.msk.bf16.mxu0 %vm2657_vm1, %v2656_v21 }
 0x86a   : > { %v1418_v0 = vpop.f32.mrf.mxu0 }
 0x86b   : > { %v1425_v1 = vpack.c.bf16 %v1418_v0, %v1418_v0  ;;  %v2518_v0 = vld [vmem:[%s2913_s1] sm:$0xff]  }
 0x86c   : > { %v2359_v2 = vpop.f32.mrf.mxu0 }
 0x86d   : > { %2364 = vmatmul.mubr.msk.bf16.vlgmr.msra.gmra.mxu1 %vm1000_vm3, %v1425_v1  ;;  %v2238_v1 = vld [vmem:[%s3270_s2] ss:$0 sm:$0xff]  ;;  %s3275_s2 = sld [smem:[#allocation33_spill]] (!%p2250_p6) }
 0x86e   : > { %v1421_v3 = vpop.f32.mrf.mxu0  ;;  %2375 = vmatprep.mubr.msk.bf16.mxu1 %vm2657_vm1, %v2656_v21 }
 0x870   : > { %v2360_v4 = vpop.f32.mrf.mxu0 }
 0x872   : > { %v1517_v5 = vpop.f32.mrf.mxu0 }
 0x873   : > { %v1518_v6 = vadd.f32 %v1517_v5, %v2983_v41 }
 0x874   : > { %v2371_v7 = vpop.f32.mrf.mxu0 }
 0x875   : > { %v1523_v8 = vsel %vm1000_vm3, %v1518_v6, -inf }
 0x876   : > { %1524 = vmax.xlane.f32.xlu0 %v1523_v8  ;;  %v1520_v9 = vpop.f32.mrf.mxu0 }
 0x878   : > { %v2372_v10 = vpop.f32.mrf.mxu0 }
 0x88c   : > { %1535 = vrot.lane.b32.xlu0 %v2966_v29, %s2669_s26  ;;  %v1589_v29 = vsel %vm1064_vm5, %v1583_v20, 0 }
 0x88d   : > { %2380 = vmatpush3.bf16.msra.mxu0 %v1589_v29 }
 0x88e   : > { %2393 = vmatprep.subr.bf16.mxu0 %v2656_v21 }
 0x8ff   : > { %v1525_v11 = vpop.xlane.xlu0 %1524 }
 0x900   : > { %v1526_v12 = vsub.f32 %v1518_v6, %v1525_v11 }
 0x902   : > { %v1527_v13 = vmul.f32 1.442695, %v1526_v12 }
 0x903   : > { %v1536_v14 = vpop.permute.xlu0 %1535 }
 0x904   : > { %2531 = vpow2.f32 %v1527_v13  ;;  %v1541_v15 = vsel %vm1064_vm5, %v1536_v14, 0 }
 0x905   : > { %2374 = vmatpush3.bf16.msra.mxu1 %v1541_v15 }
 0x906   : > { %2385 = vmatprep.subr.bf16.mxu1 %v2656_v21 }
 0x911   : > { %v2532_v41 = vpop.eup %2531 }
 0x912   : > { %v1529_v16 = vsel %vm1000_vm3, %v2532_v41, 0.0 }
 0x913   : > { %1530 = vadd.xlane.f32.xlu1 %v1529_v16 }
 0x92d   : > { %v1466_v17 = vpop.f32.mrf.mxu1 }
 0x92e   : > { %v1472_v18 = vadd.f32 %v1466_v17, %v3022_v37 }
 0x92f   : > { %v2365_v19 = vpop.f32.mrf.mxu1 }
 0x931   : > { %v1469_v22 = vpop.f32.mrf.mxu1 }
 0x933   : > { %v2366_v24 = vpop.f32.mrf.mxu1 }
 0x99c   : > { %v1531_v25 = vpop.xlane.xlu1 %1530 }
 0x99d   : > { %2533 = vrcp.f32 %v1531_v25 }
 0x9aa   : > { %v2534_v26 = vpop.eup %2533 }
 0x9ab   : > { %v1533_v27 = vmul.f32 %v2534_v26, %v2532_v41  ;;  %v2242_v41 = vld [vmem:[%s872_s22] ss:$0 sm:$0xff]  ;;  %s3276_s22 = sld [smem:[#allocation35_spill]] (!%p2250_p6) }
 0x9ad   : > { %v1534_v28 = vpack.c.bf16 %v1533_v27, %v1533_v27 }
 0x9af   : > { %2376 = vmatmul.mubr.msk.bf16.vlgmr.msra.gmra.mxu1 %vm1000_vm3, %v1534_v28 }
 0x9b0   : > { %2389 = vmatprep.mubr.msk.bf16.mxu1 %vm2657_vm1, %v2656_v21  ;;  %2386 = vmatpush3.bf16.msra.mxu1 %v2513_v50 }
 0x9b1   : > { %2387 = vmatprep.subr.bf16.mxu1 %v2656_v21 }
 0x9b4   : > { %2388 = vmatpush3.bf16.msra.mxu1 %v2514_v51 }
 0xa6f   : > { %v1577_v30 = vpop.f32.mrf.mxu1 }
 0xa70   : > { %v1584_v31 = vpack.c.bf16 %v1577_v30, %v1577_v30 }
 0xa71   : > { %v2377_v32 = vpop.f32.mrf.mxu1 }
 0xa72   : > { %2382 = vmatmul.mubr.msk.bf16.vlgmr.msra.gmra.mxu0 %vm1000_vm3, %v1584_v31 }
 0xa73   : > { %v1580_v33 = vpop.f32.mrf.mxu1  ;;  %2401 = vmatprep.mubr.msk.bf16.mxu0 %vm2657_vm1, %v2656_v21  ;;  %2394 = vmatpush3.bf16.msra.mxu0 %v2515_v61 }
 0xa74   : > { %2395 = vmatprep.subr.bf16.mxu0 %v2656_v21 }
 0xa75   : > { %v2378_v34 = vpop.f32.mrf.mxu1 }
 0xa76   : > { %v2248_v34 = vld [vmem:[%s875_s19] ss:$0 sm:$0xff] }
 0xa77   : > { %2396 = vmatpush3.bf16.msra.mxu0 %v2516_v62 }
 0xa78   : > { %2397 = vmatprep.subr.bf16.mxu0 %v2656_v21 }
 0xa7b   : > { %2398 = vmatpush3.bf16.msra.mxu0 %v2517_v63 }
 0xa7c   : > { %2399 = vmatprep.subr.bf16.mxu0 %v2656_v21 }
 0xa7f   : > { %2400 = vmatpush3.bf16.msra.mxu0 %v2518_v0 }
 0xb32   : > { %v1625_v35 = vpop.f32.mrf.mxu0 }
 0xb33   : > { %v1631_v37 = vadd.f32 %v1625_v35, %v1472_v18 }
 0xb34   : > { %v2383_v38 = vpop.f32.mrf.mxu0 }
 0xb35   : > { %v1639_v39 = vadd.f32 %v2235_v36, %v1631_v37  ;;  %v2249_v36 = vld [vmem:[%s878_s12] ss:$0 sm:$0xff] }
 0xb36   : > { %v1628_v40 = vpop.f32.mrf.mxu0 }
 0xb37   : > { %v1640_v42 = vadd.f32 %v1639_v39, %v2950_v23 }
 0xb38   : > { %v2384_v43 = vpop.f32.mrf.mxu0 }
 0xb39   : > { %v1643_v44 = vsel %vm952_vm2, %v1640_v42, 0.0 }
 0xb3a   : > { %1644 = vadd.xlane.f32.xlu1 %v1643_v44 }
 0xbc3   : > { %v1645_v45 = vpop.xlane.xlu1 %1644 }
 0xbc4   : > { %v1647_v46 = vmul.f32 0.03125, %v1645_v45 }
 0xbc6   : > { %v1648_v47 = vsub.f32 %v1640_v42, %v1647_v46 }
 0xbc8   : > { %v1649_v48 = vmul.f32 %v1648_v47, %v1648_v47 }
 0xbca   : > { %v1650_v49 = vsel %vm952_vm2, %v1649_v48, 0.0 }
 0xbcb   : > { %1651 = vadd.xlane.f32.xlu1 %v1650_v49 }
 0xc54   : > { %v1652_v23 = vpop.xlane.xlu1 %1651 }
 0xc55   : > { %v1653_v52 = vmul.f32 0.03125, %v1652_v23 }
 0xc57   : > { %v1654_v53 = vadd.f32 1e-12, %v1653_v52 }
 0xc59   : > { %2535 = vrsqrt.f32 %v1654_v53 }
 0xc66   : > { %v2536_v54 = vpop.eup %2535 }
 0xc67   : > { %v1656_v56 = vmul.f32 %v2536_v54, %v1648_v47 }
 0xc69   : > { %v1663_v58 = vmul.f32 %v2236_v55, %v1656_v56 }
 0xc6b   : > { %v1670_v59 = vadd.f32 %v2237_v57, %v1663_v58 }
 0xc6d   : > { %v1675_v60 = vpack.c.bf16 %v1670_v59, %v1670_v59 }
 0xc6f   : > { %2390 = vmatmul.mubr.msk.bf16.vlgmr.msra.gmra.mxu1 %vm952_vm2, %v1675_v60 }
 0xd2f   : > { %v1732_v2 = vpop.f32.mrf.mxu1 }
 0xd30   : > { %v1733_v3 = vadd.f32 %v2238_v1, %v1732_v2 }
 0xd31   : > { %v2391_v4 = vpop.f32.mrf.mxu1 }
 0xd32   : > { %v1738_v5 = vmul.f32 %v1733_v3, %v1733_v3 }
 0xd33   : > { %v1735_v6 = vpop.f32.mrf.mxu1 }
 0xd34   : > { %v1739_v7 = vmul.f32 %v1738_v5, %v1733_v3 }
 0xd35   : > { %v2392_v8 = vpop.f32.mrf.mxu1 }
 0xd36   : > { %v1740_v9 = vmul.f32 0.044715, %v1739_v7 }
 0xd38   : > { %v1741_v10 = vadd.f32 %v1740_v9, %v1733_v3 }
 0xd3a   : > { %v1742_v11 = vmul.f32 0.7978846, %v1741_v10 }
 0xd3c   : > { %2537 = vtanh.f32 %v1742_v11 }
 0xd49   : > { %v2538_v21 = vpop.eup %2537 }
 0xd4a   : > { %v1744_v12 = vadd.f32 1.0, %v2538_v21 }
 0xd4c   : > { %v1745_v13 = vmul.f32 0.5, %v1744_v12 }
 0xd4e   : > { %v1746_v14 = vmul.f32 %v1745_v13, %v1733_v3 }
 0xd50   : > { %v1755_v15 = vpack.c.bf16 %v1746_v14, %v1746_v14 }
 0xd52   : > { %2402 = vmatmul.mubr.msk.bf16.vlgmr.msra.gmra.mxu0 %vm1787_vm6, %v1755_v15 }
 0xe12   : > { %v1825_v16 = vpop.f32.mrf.mxu0 }
 0xe13   : > { %v1826_v17 = vadd.f32 %v2242_v41, %v1825_v16 }
 0xe14   : > { %v2403_v18 = vpop.f32.mrf.mxu0 }
 0xe15   : > { %v1831_v19 = vadd.f32 %v1826_v17, %v1670_v59 }
 0xe16   : > { %v1828_v20 = vpop.f32.mrf.mxu0 }
 0xe17   : > { %v1834_v29 = vsel %vm952_vm2, %v1831_v19, 0.0 }
 0xe18   : > { %1835 = vadd.xlane.f32.xlu1 %v1834_v29  ;;  %v2404_v22 = vpop.f32.mrf.mxu0 }
 0xea1   : > { %v1836_v24 = vpop.xlane.xlu1 %1835 }
 0xea2   : > { %v1837_v25 = vmul.f32 0.03125, %v1836_v24 }
 0xea4   : > { %v1838_v26 = vsub.f32 %v1831_v19, %v1837_v25 }
 0xea6   : > { %v1839_v27 = vmul.f32 %v1838_v26, %v1838_v26 }
 0xea8   : > { %v1840_v28 = vsel %vm952_vm2, %v1839_v27, 0.0 }
 0xea9   : > { %1841 = vadd.xlane.f32.xlu1 %v1840_v28 }
 0xf32   : > { %v1842_v30 = vpop.xlane.xlu1 %1841 }
 0xf33   : > { %v1843_v31 = vmul.f32 0.03125, %v1842_v30 }
 0xf35   : > { %v1844_v32 = vadd.f32 1e-12, %v1843_v31 }
 0xf37   : > { %2539 = vrsqrt.f32 %v1844_v32 }
 0xf44   : > { %v2540_v33 = vpop.eup %2539 }
 0xf45   : > { %v1846_v35 = vmul.f32 %v2540_v33, %v1838_v26 }
 0xf47   : > { %v1853_v37 = vmul.f32 %v2248_v34, %v1846_v35  ;;  %1865 = sbr.rel (%p2250_p6) target bundleno = 4335 (0x10ef), region = 112 }
 0xf49   : > { %v1860_v38 = vadd.f32 %v2249_v36, %v1853_v37 }
 0xf4b   : > { %1861 = vst.msk [vmem:[#allocation2] sm:$0xff] %vm952_vm2, %v1860_v38 }
 0xf4c   : > { %v2541_v39 = vld [vmem:[%s3273_s3 + $0x8] sm:$0xff]   ;;  %v2670_v40 = vmov 0.0   ;;  %v2542_v42 = vld [vmem:[%s3273_s3] sm:$0xff]   ;;  %vm2671_vm7 = vmmov 0   ;;  %v1870_v43 = vpack.c.bf16 %v1860_v38, %v1860_v38 }
 0xf4d   : > { %2405 = vmatprep.subr.bf16.mxu0 %v2670_v40  ;;  %2413 = vmatprep.subr.bf16.mxu1 %v2670_v40  ;;  %v2543_v44 = vld [vmem:[%s3274_s4 + $0x8] sm:$0xff]   ;;  %v2544_v45 = vld [vmem:[%s3274_s4] sm:$0xff]  }
 0xf4e   : > { %2406 = vmatpush3.bf16.msra.mxu0 %v2541_v39  ;;  %2409 = vmatprep.mubr.msk.bf16.mxu0 %vm2671_vm7, %v2670_v40  ;;  %v1871_v46 = vld [vmem:[%s3275_s2] sm:$0x1] }
 0xf4f   : > { %2407 = vmatprep.subr.bf16.mxu0 %v2670_v40  ;;  %2417 = vmatprep.mubr.msk.bf16.mxu1 %vm2671_vm7, %v2670_v40  ;;  %v1933_v53 = vld [vmem:[%s3276_s22] sm:$0x1] }
 0xf50   : > { %2414 = vmatpush3.bf16.msra.mxu1 %v2543_v44 }
 0xf51   : > { %2415 = vmatprep.subr.bf16.mxu1 %v2670_v40 }
 0xf52   : > { %2408 = vmatpush3.bf16.msra.mxu0 %v2542_v42 }
 0xf54   : > { %2416 = vmatpush3.bf16.msra.mxu1 %v2544_v45 }
 0xf55   : > { %2410 = vmatmul.mubr.msk.bf16.vlgmr.msra.gmra.mxu0 %vm952_vm2, %v1870_v43 }
0x1015   : > { %v1921_v47 = vpop.f32.mrf.mxu0 }
0x1016   : > { %v1922_v48 = vadd.f32 %v1921_v47, %v1871_v46 }
0x1017   : > { %v2411_v49 = vpop.f32.mrf.mxu0 }
0x1018   : > { %2545 = vtanh.f32 %v1922_v48 }
0x1019   : > { %v1924_v50 = vpop.f32.mrf.mxu0 }
0x101b   : > { %v2412_v51 = vpop.f32.mrf.mxu0 }
0x1025   : > { %v2546_v23 = vpop.eup %2545 }
0x1026   : > { %v1932_v52 = vpack.c.bf16 %v2546_v23, %v2546_v23 }
0x1028   : > { %2418 = vmatmul.mubr.msk.bf16.vlgmr.msra.gmra.mxu1 %vm952_vm2, %v1932_v52 }
0x10e8   : > { %v1983_v54 = vpop.f32.mrf.mxu1 }
0x10e9   : > { %v1984_v55 = vadd.f32 %v1983_v54, %v1933_v53 }
0x10ea   : > { %v2419_v56 = vpop.f32.mrf.mxu1 }
0x10eb   : > { %1989 = vst [vmem:[%s2929_s27] sm:$0x1] %v1984_v55 }
0x10ec   : > { %v1986_v57 = vpop.f32.mrf.mxu1 }
0x10ee   : > { %v2420_v58 = vpop.f32.mrf.mxu1 }
0x10ef PF: > { %s3277_s29 = sld [smem:[#allocation12_spill]]  ;;  %s2003_s19 = sshll.u32 %s2929_s27, 4  ;;  %s2004_s19 = int_to_ptr.vmem [resolvable:$true] %s2003_s19 }
0x10f0   : > { %s3279_s18 = sld [smem:[#allocation36_spill]]  ;;  %s3280_s25 = sand.u32 1, %s2629_s23  }
0x10f1   : > { %s1991_s12 = scalar_lea.sflag [#allocation6], %s3280_s25  ;;  %s2559_s6 = scalar_lea.vmem %s2004_s19, 16 }
0x10f2   : > { %p2560_p7 = scmp.ne.s32.totalorder %s2004_s19, %s2559_s6  ;;  %s2672_s8 = smov [#allocation5]  }
0x10f3   : > { %s2563_s20 = sshll.u32 %s2672_s8, 4  ;;  %s2564_s20 = int_to_ptr.vmem [resolvable:$false] %s2563_s20 }
0x10f4   : > { %p2561_p9 = pnand %p2560_p7, %p2840_p8  ;;  %s2565_s21 = scalar_lea.vmem %s2564_s20, 32 }
0x10f5   : > { %s2257_s26 = sshll.u32 %s3277_s29, 4  ;;  %p2566_p11 = scmp.lt.s32.totalorder %s2004_s19, %s2564_s20 }
0x10f6   : > { %s2001_s5 = scalar_lea.hbm %s3279_s18, %s2257_s26  ;;  %p2562_p10 = pneg %p2561_p9 }
0x10f7   : > { %p2567_p12 = scmp.lt.s32.totalorder %s2565_s21, %s2559_s6 }
0x10f9   : > { %p2568_p13 = por %p2567_p12, %p2566_p11 }
0x10fb   : > { %p2569_p1 = pnand %p2568_p13, %p2562_p10 }
0x10fd   : > { %2572 = shalt.err (!%p2569_p1)
}
0x10fe   : > { %s2573_s0 = scalar_lea.hbm %s2001_s5, 16  ;;  %s2577_s1 = scalar_lea.hbm %s3279_s18, 32 }
0x10ff   : > { %p2574_p2 = scmp.ne.s32.totalorder %s2001_s5, %s2573_s0  ;;  %p2578_p5 = scmp.lt.s32.totalorder %s2001_s5, %s3279_s18 }
0x1100   : > { %p2579_p6 = scmp.lt.s32.totalorder %s2577_s1, %s2573_s0 }
0x1101   : > { %p2575_p3 = pnand %p2574_p2, %p2840_p8 }
0x1102   : > { %p2580_p7 = por %p2579_p6, %p2578_p5 }
0x1103   : > { %p2576_p4 = pneg %p2575_p3 }
0x1105   : > { %p2581_p9 = pnand %p2580_p7, %p2576_p4 }
0x1107   : > { %2584 = shalt.err (!%p2581_p9)
}
0x1108   : > { %2421 = dma.vmem_to_hbm [thread:$0]  (%p2840_p8), %s2004_s19, 16, %s2001_s5, %s1991_s12  }
0x1109 PF: > { %s3281_s29 = sld [smem:[#allocation15_spill]] }
0x110a   : > { %s3282_s26 = sld [smem:[#allocation9_spill]] }
0x110f   : > { %p2427_p10 = scmp.ge.s32.totalorder %s3281_s29, 2 }
0x1110   : > { %s2015_s16 = sand.u32 1, %s3282_s26  }
0x1111   : > { %p2424_p11 = pnand %p2427_p10, %p2850_p0  ;;  %s2016_s25 = scalar_lea.sflag [#allocation6], %s2015_s16 }
0x1113   : > { %p2425_p12 = pneg %p2424_p11 }
0x1115   : > { %2620 = dma.done.wait (%p2425_p12), %s2016_s25, 16  }
0x1116   : > { %2622 = vsyncadd (%p2425_p12), %s2016_s25, 4294967280  ;;  %s41_s16 = sadd.s32 1, %s3281_s29   ;;  %s3284_s6 = sld [smem:[#allocation10_spill]] }
0x1117   : > { %p38_p13 = scmp.ge.s32.totalorder %s41_s16, 6   ;;  %s3285_s1 = sld [smem:[#allocation20_spill]] }
0x1118   : > { %s3286_s5 = sld [smem:[#allocation13_spill]]  ;;  %s3290_s0 = smov %s2629_s23 }
0x1119   : > { %s3287_s24 = sld [smem:[#allocation14_spill]] }
0x111a   : > { %s3288_s19 = sld [smem:[#allocation16_spill]] }
0x111b   : > { %s3289_s25 = sld [smem:[#allocation18_spill]] }
0x111c   : > { %s3291_s23 = smov %s3284_s6  ;;  %40 = sbr.rel (!%p38_p13) target bundleno = 41 (0x29), region = 186 }
0x1120   : > { %s3292_s6 = smov %s3288_s19 }
0x1121   :  { %2020 = vsyncpa [#allocation6], 1 }
0x1122   :  { %2022 = vsyncpa [#allocation6 + $0x1], 1 }

</bundles_post_ra>
